<compile_context>
chip_gen: v7x
topology: tpu7x:2x2x1
jax: 0.10.0
libtpu: 0.0.40
codegen_flags: <defaults>
</compile_context>

<pallas_src>
import functools
import math

import numpy as np
import jax
import jax.numpy as jnp
from jax.experimental import pallas as pl
from jax.experimental.pallas import tpu as pltpu


# ---------------------------------------------------------------------------
# Fused kernel (one image per grid step)
# ---------------------------------------------------------------------------
def eo_fused_kernel(ir_ref, vi_ref, mask_ref,
                    enc_w_ref, enc_b_ref,
                    att_w_ref, att_b_ref,
                    fea_w_ref,
                    dec_w_ref, dec_b_ref,
                    ir_out_ref, vi_out_ref, ir_emb_ref, vi_emb_ref,
                    *, H, W):
    HW = H * W
    f32 = jnp.float32

    masks = mask_ref[...].astype(f32)                   # (9, HW), hoisted once
    mask_rows = [masks[t:t + 1, :] for t in range(9)]   # each (1, HW)

    def im2col(x):
        """x: (C, HW) f32 -> (9*C, HW) f32, tap-major / channel-minor rows."""
        taps = []
        t = 0
        for dy in range(3):
            for dx in range(3):
                off = (dy - 1) * W + (dx - 1)
                if off == 0:
                    shifted = x
                else:
                    # shifted[p] = x[(p + off) mod HW]; wrap lanes are masked.
                    shifted = pltpu.roll(x, (-off) % HW, 1)
                taps.append(shifted * mask_rows[t])
                t += 1
        return jnp.concatenate(taps, axis=0)

    def conv(w, patches, b=None):
        acc = jnp.dot(w, patches, preferred_element_type=f32)
        if b is not None:
            acc = acc + b                                # (C,1) lane-broadcast
        return acc

    relu = lambda z: jnp.maximum(z, 0.0)
    hsig = lambda z: jnp.clip(z * (1.0 / 6.0) + 0.5, 0.0, 1.0)

    x_ir = ir_ref[0].astype(f32)                         # (Cin_p, HW)
    x_vi = vi_ref[0].astype(f32)

    # -- encoders: conv3x3 + bias + relu ------------------------------------
    ir_embed = relu(conv(enc_w_ref[0], im2col(x_ir), enc_b_ref[0]))
    vi_embed = relu(conv(enc_w_ref[1], im2col(x_vi), enc_b_ref[1]))
    ir_emb_ref[...] = ir_embed[None].astype(ir_emb_ref.dtype)
    vi_emb_ref[...] = vi_embed[None].astype(vi_emb_ref.dtype)

    # -- shared im2col operands (reused by att / feature / chimera) ---------
    p_ir = im2col(ir_embed)                              # (9*hidden, HW)
    p_vi = im2col(vi_embed)
    p_ch = p_ir + p_vi                                   # = im2col(chimera)
    chimera = ir_embed + vi_embed

    # -- Att_Block_lite: x * hardsigmoid(conv3x3(x) + b) --------------------
    ir_coarse = ir_embed * hsig(conv(att_w_ref[0], p_ir, att_b_ref[0]))
    vi_coarse = vi_embed * hsig(conv(att_w_ref[1], p_vi, att_b_ref[1]))
    ir_fine = chimera * hsig(conv(att_w_ref[2], p_ch, att_b_ref[2]))
    vi_fine = chimera * hsig(conv(att_w_ref[3], p_ch, att_b_ref[3]))

    # -- feature_extra: |dwconv1(x)| + |dwconv2(x)| (block-diag weights) ----
    ir_feat = jnp.abs(conv(fea_w_ref[0], p_ir)) + jnp.abs(conv(fea_w_ref[1], p_ir))
    vi_feat = jnp.abs(conv(fea_w_ref[2], p_vi)) + jnp.abs(conv(fea_w_ref[3], p_vi))

    # -- decoders ------------------------------------------------------------
    ir_out = relu(conv(dec_w_ref[0], im2col(ir_coarse + ir_feat + ir_fine),
                       dec_b_ref[0]))
    vi_out = relu(conv(dec_w_ref[1], im2col(vi_coarse + vi_feat + vi_fine),
                       dec_b_ref[1]))
    ir_out_ref[...] = ir_out[None].astype(ir_out_ref.dtype)
    vi_out_ref[...] = vi_out[None].astype(vi_out_ref.dtype)


# ---------------------------------------------------------------------------
# Weight / mask preprocessing (tiny, runs inside the jitted wrapper)
# ---------------------------------------------------------------------------
def _dense_w2d(w):
    """(3, 3, Cin, Cout) -> (Cout, 9*Cin), tap-major / cin-minor."""
    kh, kw, cin, cout = w.shape
    return jnp.transpose(w, (3, 0, 1, 2)).reshape(cout, kh * kw * cin)


def _dw_blockdiag(w):
    """Depthwise (3, 3, C) -> block-diagonal dense (C, 9*C)."""
    kh, kw, c = w.shape
    w9c = w.reshape(kh * kw, c)                                     # (9, C)
    blk = jnp.eye(c, dtype=w.dtype)[:, None, :] * jnp.transpose(w9c)[:, :, None]
    return blk.reshape(c, kh * kw * c)                              # (C, 9*C)


def _conv_masks(H, W):
    """(9, H*W) validity masks for the 9 taps of a padding=1 3x3 conv."""
    y = np.arange(H)[:, None]
    x = np.arange(W)[None, :]
    rows = []
    for dy in range(3):
        for dx in range(3):
            oy, ox = dy - 1, dx - 1
            valid = ((y + oy >= 0) & (y + oy < H) &
                     (x + ox >= 0) & (x + ox < W))
            rows.append(valid.reshape(-1))
    return jnp.asarray(np.stack(rows, 0), dtype=jnp.float32)


# ---------------------------------------------------------------------------
# Forward wrapper (single pallas_call)
# ---------------------------------------------------------------------------
@jax.jit
def eo_forward(params, ir, vi):
    """ir, vi: (N, Cin, H, W)  (NCHW, like the PyTorch module)."""
    p = params
    N, Cin, H, W = ir.shape
    hidden = p["ir_enc_w"].shape[-1]
    out_c = p["ir_dec_w"].shape[-1]
    HW = H * W

    # Pad Cin up to a multiple of 8 so every im2col slab is sublane-aligned
    # (zero channels contribute nothing: encoder weights are zero-padded too).
    cin_p = -(-Cin // 8) * 8
    pad_c = cin_p - Cin
    ir_f = jnp.pad(ir.reshape(N, Cin, HW), ((0, 0), (0, pad_c), (0, 0)))
    vi_f = jnp.pad(vi.reshape(N, Cin, HW), ((0, 0), (0, pad_c), (0, 0)))
    pad_w = lambda w: jnp.pad(w, ((0, 0), (0, 0), (0, pad_c), (0, 0)))

    enc_w = jnp.stack([_dense_w2d(pad_w(p["ir_enc_w"])),
                       _dense_w2d(pad_w(p["vi_enc_w"]))])
    enc_b = jnp.stack([p["ir_enc_b"].reshape(hidden, 1),
                       p["vi_enc_b"].reshape(hidden, 1)])
    att_w = jnp.stack([_dense_w2d(p["ir_att1_w"]), _dense_w2d(p["vi_att1_w"]),
                       _dense_w2d(p["ir_att2_w"]), _dense_w2d(p["vi_att2_w"])])
    att_b = jnp.stack([p["ir_att1_b"].reshape(hidden, 1),
                       p["vi_att1_b"].reshape(hidden, 1),
                       p["ir_att2_b"].reshape(hidden, 1),
                       p["vi_att2_b"].reshape(hidden, 1)])
    fea_w = jnp.stack([_dw_blockdiag(p["ir_fea_w1"]), _dw_blockdiag(p["ir_fea_w2"]),
                       _dw_blockdiag(p["vi_fea_w1"]), _dw_blockdiag(p["vi_fea_w2"])])
    dec_w = jnp.stack([_dense_w2d(p["ir_dec_w"]), _dense_w2d(p["vi_dec_w"])])
    dec_b = jnp.stack([p["ir_dec_b"].reshape(out_c, 1),
                       p["vi_dec_b"].reshape(out_c, 1)])
    masks = _conv_masks(H, W)

    kernel = functools.partial(eo_fused_kernel, H=H, W=W)

    per_img = lambda c: pl.BlockSpec((1, c, HW), lambda n: (n, 0, 0))
    full = lambda *shape: pl.BlockSpec(shape, lambda n: (0,) * len(shape))

    out_shape = (jax.ShapeDtypeStruct((N, out_c, HW), ir.dtype),
                 jax.ShapeDtypeStruct((N, out_c, HW), vi.dtype),
                 jax.ShapeDtypeStruct((N, hidden, HW), ir.dtype),
                 jax.ShapeDtypeStruct((N, hidden, HW), vi.dtype))

    ir_out, vi_out, ir_emb, vi_emb = pl.pallas_call(
        kernel,
        out_shape=out_shape,
        grid=(N,),
        in_specs=[
            per_img(cin_p), per_img(cin_p),
            full(9, HW),
            full(2, hidden, 9 * cin_p), full(2, hidden, 1),
            full(4, hidden, 9 * hidden), full(4, hidden, 1),
            full(4, hidden, 9 * hidden),
            full(2, out_c, 9 * hidden), full(2, out_c, 1),
        ],
        out_specs=(per_img(out_c), per_img(out_c),
                   per_img(hidden), per_img(hidden)),
        compiler_params=pltpu.CompilerParams(
            dimension_semantics=("parallel",)),
    )(ir_f, vi_f, masks, enc_w, enc_b, att_w, att_b, fea_w, dec_w, dec_b)

    return (ir_out.reshape(N, out_c, H, W),
            vi_out.reshape(N, out_c, H, W),
            ir_emb.reshape(N, hidden, H, W),
            vi_emb.reshape(N, hidden, H, W))


# ---------------------------------------------------------------------------
# Parameter init (kaiming_normal fan_out / relu, bias = 0), deterministic
# ---------------------------------------------------------------------------
def _kaiming_dense(key, cin, cout, k=3):
    fan_out = cout * k * k
    std = math.sqrt(2.0 / fan_out)
    return std * jax.random.normal(key, (k, k, cin, cout), jnp.float32)


def _kaiming_depthwise(key, c, k=3):
    fan_out = c * k * k
    std = math.sqrt(2.0 / fan_out)
    return std * jax.random.normal(key, (k, k, c), jnp.float32)


def init_eo_params(key, in_channels, hidden, out_channels):
    keys = jax.random.split(key, 12)
    z = lambda c: jnp.zeros((1, c), jnp.float32)
    return {
        "ir_enc_w": _kaiming_dense(keys[0], in_channels, hidden), "ir_enc_b": z(hidden),
        "vi_enc_w": _kaiming_dense(keys[1], in_channels, hidden), "vi_enc_b": z(hidden),
        "ir_dec_w": _kaiming_dense(keys[2], hidden, out_channels), "ir_dec_b": z(out_channels),
        "vi_dec_w": _kaiming_dense(keys[3], hidden, out_channels), "vi_dec_b": z(out_channels),
        "ir_fea_w1": _kaiming_depthwise(keys[4], hidden),
        "ir_fea_w2": _kaiming_depthwise(keys[5], hidden),
        "vi_fea_w1": _kaiming_depthwise(keys[6], hidden),
        "vi_fea_w2": _kaiming_depthwise(keys[7], hidden),
        "ir_att1_w": _kaiming_dense(keys[8], hidden, hidden), "ir_att1_b": z(hidden),
        "ir_att2_w": _kaiming_dense(keys[9], hidden, hidden), "ir_att2_b": z(hidden),
        "vi_att1_w": _kaiming_dense(keys[10], hidden, hidden), "vi_att1_b": z(hidden),
        "vi_att2_w": _kaiming_dense(keys[11], hidden, hidden), "vi_att2_b": z(hidden),
    }


# ---------------------------------------------------------------------------
# Pure-JAX reference (for correctness check only)
# ---------------------------------------------------------------------------
def _conv3x3_ref(x, w, b):
    out = jax.lax.conv_general_dilated(
        x, w, (1, 1), ((1, 1), (1, 1)),
        dimension_numbers=("NCHW", "HWIO", "NCHW"),
        precision=jax.lax.Precision.HIGHEST)
    return out + b.reshape(1, -1, 1, 1)


def _dwconv3x3_ref(x, w):
    c = w.shape[-1]
    return jax.lax.conv_general_dilated(
        x, w.reshape(3, 3, 1, c), (1, 1), ((1, 1), (1, 1)),
        dimension_numbers=("NCHW", "HWIO", "NCHW"),
        feature_group_count=c, precision=jax.lax.Precision.HIGHEST)


@jax.jit
def eo_forward_ref(params, ir, vi):
    p = params
    relu = lambda z: jnp.maximum(z, 0.0)
    hsig = lambda z: jnp.clip(z / 6.0 + 0.5, 0.0, 1.0)
    att = lambda x, w, b: x * hsig(_conv3x3_ref(x, w, b))
    fea = lambda x, w1, w2: jnp.abs(_dwconv3x3_ref(x, w1)) + jnp.abs(_dwconv3x3_ref(x, w2))

    ir_embed = relu(_conv3x3_ref(ir, p["ir_enc_w"], p["ir_enc_b"]))
    vi_embed = relu(_conv3x3_ref(vi, p["vi_enc_w"], p["vi_enc_b"]))
    chimera = ir_embed + vi_embed
    ir_coarse = att(ir_embed, p["ir_att1_w"], p["ir_att1_b"])
    vi_coarse = att(vi_embed, p["vi_att1_w"], p["vi_att1_b"])
    ir_fine = att(chimera, p["ir_att2_w"], p["ir_att2_b"])
    vi_fine = att(chimera, p["vi_att2_w"], p["vi_att2_b"])
    ir_feature = fea(ir_embed, p["ir_fea_w1"], p["ir_fea_w2"])
    vi_feature = fea(vi_embed, p["vi_fea_w1"], p["vi_fea_w2"])
    ir_out = relu(_conv3x3_ref(ir_coarse + ir_feature + ir_fine,
                               p["ir_dec_w"], p["ir_dec_b"]))
    vi_out = relu(_conv3x3_ref(vi_coarse + vi_feature + vi_fine,
                               p["vi_dec_w"], p["vi_dec_b"]))
    return ir_out, vi_out, ir_embed, vi_embed


if __name__ == "__main__":
    key = jax.random.PRNGKey(0)
    k_ir, k_vi, k_par = jax.random.split(key, 3)

    N, IN_C, HIDDEN, OUT_C, H, W = 2, 4, 8, 4, 16, 16

    ir = jax.random.normal(k_ir, (N, IN_C, H, W), jnp.float32)   # NCHW
    vi = jax.random.normal(k_vi, (N, IN_C, H, W), jnp.float32)   # NCHW
    params = init_eo_params(k_par, IN_C, HIDDEN, OUT_C)

    outs = jax.block_until_ready(eo_forward(params, ir, vi))
    refs = jax.block_until_ready(eo_forward_ref(params, ir, vi))

    names = ("ir_out", "vi_out", "ir_embed", "vi_embed")
    shapes = ((N, OUT_C, H, W), (N, OUT_C, H, W),
              (N, HIDDEN, H, W), (N, HIDDEN, H, W))
    for name, o, r, shp in zip(names, outs, refs, shapes):
        assert o.shape == shp, (name, o.shape, shp)
        assert bool(jnp.isfinite(o).all()), name
        err = float(jnp.max(jnp.abs(o - r)))
        tol = 1e-2 + 3e-2 * float(jnp.max(jnp.abs(r)))
        assert err <= tol, (name, err, tol)

    print("KERNEL_OK")
</pallas_src>

<mosaic_0001>
module attributes {stable_mosaic.version = 11 : i64} {
  func.func @eo_fused_kernel(%arg0: i32, %arg1: memref<1x8x256xf32, #tpu.memory_space<vmem>>, %arg2: memref<1x8x256xf32, #tpu.memory_space<vmem>>, %arg3: memref<9x256xf32, #tpu.memory_space<vmem>>, %arg4: memref<2x8x72xf32, #tpu.memory_space<vmem>>, %arg5: memref<2x8x1xf32, #tpu.memory_space<vmem>>, %arg6: memref<4x8x72xf32, #tpu.memory_space<vmem>>, %arg7: memref<4x8x1xf32, #tpu.memory_space<vmem>>, %arg8: memref<4x8x72xf32, #tpu.memory_space<vmem>>, %arg9: memref<2x4x72xf32, #tpu.memory_space<vmem>>, %arg10: memref<2x4x1xf32, #tpu.memory_space<vmem>>, %arg11: memref<1x4x256xf32, #tpu.memory_space<vmem>>, %arg12: memref<1x4x256xf32, #tpu.memory_space<vmem>>, %arg13: memref<1x8x256xf32, #tpu.memory_space<vmem>>, %arg14: memref<1x8x256xf32, #tpu.memory_space<vmem>>) attributes {dimension_semantics = [#tpu.dimension_semantics<parallel>], iteration_bounds = array<i64: 2>, scalar_prefetch = 0 : i64, scratch_operands = 0 : i64, tpu.core_type = #tpu.core_type<tc>, window_params = [{transform_indices = @transform_0, window_bounds = array<i64: 1, 8, 256>}, {transform_indices = @transform_1, window_bounds = array<i64: 1, 8, 256>}, {pipeline_mode = #tpu.pipeline_mode<synchronous>, transform_indices = @transform_2, window_bounds = array<i64: 9, 256>}, {pipeline_mode = #tpu.pipeline_mode<synchronous>, transform_indices = @transform_3, window_bounds = array<i64: 2, 8, 72>}, {pipeline_mode = #tpu.pipeline_mode<synchronous>, transform_indices = @transform_4, window_bounds = array<i64: 2, 8, 1>}, {pipeline_mode = #tpu.pipeline_mode<synchronous>, transform_indices = @transform_5, window_bounds = array<i64: 4, 8, 72>}, {pipeline_mode = #tpu.pipeline_mode<synchronous>, transform_indices = @transform_6, window_bounds = array<i64: 4, 8, 1>}, {pipeline_mode = #tpu.pipeline_mode<synchronous>, transform_indices = @transform_7, window_bounds = array<i64: 4, 8, 72>}, {pipeline_mode = #tpu.pipeline_mode<synchronous>, transform_indices = @transform_8, window_bounds = array<i64: 2, 4, 72>}, {pipeline_mode = #tpu.pipeline_mode<synchronous>, transform_indices = @transform_9, window_bounds = array<i64: 2, 4, 1>}, {transform_indices = @transform_10, window_bounds = array<i64: 1, 4, 256>}, {transform_indices = @transform_11, window_bounds = array<i64: 1, 4, 256>}, {transform_indices = @transform_12, window_bounds = array<i64: 1, 8, 256>}, {transform_indices = @transform_13, window_bounds = array<i64: 1, 8, 256>}]} {
    %c0 = arith.constant 0 : index
    %c0_0 = arith.constant 0 : index
    %0 = vector.load %arg3[%c0, %c0_0] : memref<9x256xf32, #tpu.memory_space<vmem>>, vector<9x256xf32>
    %1 = vector.extract_strided_slice %0 {offsets = [0, 0], sizes = [1, 256], strides = [1, 1]} : vector<9x256xf32> to vector<1x256xf32>
    %2 = vector.extract_strided_slice %0 {offsets = [1, 0], sizes = [1, 256], strides = [1, 1]} : vector<9x256xf32> to vector<1x256xf32>
    %3 = vector.extract_strided_slice %0 {offsets = [2, 0], sizes = [1, 256], strides = [1, 1]} : vector<9x256xf32> to vector<1x256xf32>
    %4 = vector.extract_strided_slice %0 {offsets = [3, 0], sizes = [1, 256], strides = [1, 1]} : vector<9x256xf32> to vector<1x256xf32>
    %5 = vector.extract_strided_slice %0 {offsets = [4, 0], sizes = [1, 256], strides = [1, 1]} : vector<9x256xf32> to vector<1x256xf32>
    %6 = vector.extract_strided_slice %0 {offsets = [5, 0], sizes = [1, 256], strides = [1, 1]} : vector<9x256xf32> to vector<1x256xf32>
    %7 = vector.extract_strided_slice %0 {offsets = [6, 0], sizes = [1, 256], strides = [1, 1]} : vector<9x256xf32> to vector<1x256xf32>
    %8 = vector.extract_strided_slice %0 {offsets = [7, 0], sizes = [1, 256], strides = [1, 1]} : vector<9x256xf32> to vector<1x256xf32>
    %9 = vector.extract_strided_slice %0 {offsets = [8, 0], sizes = [1, 256], strides = [1, 1]} : vector<9x256xf32> to vector<1x256xf32>
    %c0_1 = arith.constant 0 : index
    %c0_2 = arith.constant 0 : index
    %c0_3 = arith.constant 0 : index
    %10 = vector.load %arg1[%c0_1, %c0_2, %c0_3] : memref<1x8x256xf32, #tpu.memory_space<vmem>>, vector<1x8x256xf32>
    %11 = vector.shape_cast %10 : vector<1x8x256xf32> to vector<8x256xf32>
    %c0_4 = arith.constant 0 : index
    %c0_5 = arith.constant 0 : index
    %c0_6 = arith.constant 0 : index
    %12 = vector.load %arg2[%c0_4, %c0_5, %c0_6] : memref<1x8x256xf32, #tpu.memory_space<vmem>>, vector<1x8x256xf32>
    %13 = vector.shape_cast %12 : vector<1x8x256xf32> to vector<8x256xf32>
    %c0_7 = arith.constant 0 : index
    %c0_8 = arith.constant 0 : index
    %c0_9 = arith.constant 0 : index
    %14 = vector.load %arg4[%c0_7, %c0_8, %c0_9] : memref<2x8x72xf32, #tpu.memory_space<vmem>>, vector<1x8x72xf32>
    %15 = vector.shape_cast %14 : vector<1x8x72xf32> to vector<8x72xf32>
    %c17_i32 = arith.constant 17 : i32
    %16 = tpu.dynamic_rotate %11 by %c17_i32 dim 1 : vector<8x256xf32>, i32 -> vector<8x256xf32>
    %17 = vector.broadcast %1 : vector<1x256xf32> to vector<8x256xf32>
    %18 = arith.mulf %16, %17 : vector<8x256xf32>
    %c16_i32 = arith.constant 16 : i32
    %19 = tpu.dynamic_rotate %11 by %c16_i32 dim 1 : vector<8x256xf32>, i32 -> vector<8x256xf32>
    %20 = vector.broadcast %2 : vector<1x256xf32> to vector<8x256xf32>
    %21 = arith.mulf %19, %20 : vector<8x256xf32>
    %c15_i32 = arith.constant 15 : i32
    %22 = tpu.dynamic_rotate %11 by %c15_i32 dim 1 : vector<8x256xf32>, i32 -> vector<8x256xf32>
    %23 = vector.broadcast %3 : vector<1x256xf32> to vector<8x256xf32>
    %24 = arith.mulf %22, %23 : vector<8x256xf32>
    %c1_i32 = arith.constant 1 : i32
    %25 = tpu.dynamic_rotate %11 by %c1_i32 dim 1 : vector<8x256xf32>, i32 -> vector<8x256xf32>
    %26 = vector.broadcast %4 : vector<1x256xf32> to vector<8x256xf32>
    %27 = arith.mulf %25, %26 : vector<8x256xf32>
    %28 = vector.broadcast %5 : vector<1x256xf32> to vector<8x256xf32>
    %29 = arith.mulf %11, %28 : vector<8x256xf32>
    %c255_i32 = arith.constant 255 : i32
    %30 = tpu.dynamic_rotate %11 by %c255_i32 dim 1 : vector<8x256xf32>, i32 -> vector<8x256xf32>
    %31 = vector.broadcast %6 : vector<1x256xf32> to vector<8x256xf32>
    %32 = arith.mulf %30, %31 : vector<8x256xf32>
    %c241_i32 = arith.constant 241 : i32
    %33 = tpu.dynamic_rotate %11 by %c241_i32 dim 1 : vector<8x256xf32>, i32 -> vector<8x256xf32>
    %34 = vector.broadcast %7 : vector<1x256xf32> to vector<8x256xf32>
    %35 = arith.mulf %33, %34 : vector<8x256xf32>
    %c240_i32 = arith.constant 240 : i32
    %36 = tpu.dynamic_rotate %11 by %c240_i32 dim 1 : vector<8x256xf32>, i32 -> vector<8x256xf32>
    %37 = vector.broadcast %8 : vector<1x256xf32> to vector<8x256xf32>
    %38 = arith.mulf %36, %37 : vector<8x256xf32>
    %c239_i32 = arith.constant 239 : i32
    %39 = tpu.dynamic_rotate %11 by %c239_i32 dim 1 : vector<8x256xf32>, i32 -> vector<8x256xf32>
    %40 = vector.broadcast %9 : vector<1x256xf32> to vector<8x256xf32>
    %41 = arith.mulf %39, %40 : vector<8x256xf32>
    %42 = tpu.concatenate %18, %21, %24, %27, %29, %32, %35, %38, %41 in 0 : vector<8x256xf32>, vector<8x256xf32>, vector<8x256xf32>, vector<8x256xf32>, vector<8x256xf32>, vector<8x256xf32>, vector<8x256xf32>, vector<8x256xf32>, vector<8x256xf32> -> vector<72x256xf32>
    %c0_10 = arith.constant 0 : index
    %c0_11 = arith.constant 0 : index
    %c0_12 = arith.constant 0 : index
    %43 = vector.load %arg5[%c0_10, %c0_11, %c0_12] : memref<2x8x1xf32, #tpu.memory_space<vmem>>, vector<1x8x1xf32>
    %44 = vector.shape_cast %43 : vector<1x8x1xf32> to vector<8x1xf32>
    %cst = arith.constant dense<0.000000e+00> : vector<8x256xf32>
    %45 = tpu.matmul %15, %42, %cst {dimension_numbers = #tpu.dot_dimension_numbers<[1], [0], [0], [1], [0, 0, 1, 1], [], []>} : vector<8x72xf32>, vector<72x256xf32>, vector<8x256xf32> -> vector<8x256xf32>
    %46 = vector.broadcast %44 : vector<8x1xf32> to vector<8x256xf32>
    %47 = arith.addf %45, %46 : vector<8x256xf32>
    %cst_13 = arith.constant 0.000000e+00 : f32
    %48 = vector.broadcast %cst_13 : f32 to vector<8x256xf32>
    %49 = arith.maximumf %47, %48 : vector<8x256xf32>
    %c1 = arith.constant 1 : index
    %c0_14 = arith.constant 0 : index
    %c0_15 = arith.constant 0 : index
    %50 = vector.load %arg4[%c1, %c0_14, %c0_15] : memref<2x8x72xf32, #tpu.memory_space<vmem>>, vector<1x8x72xf32>
    %51 = vector.shape_cast %50 : vector<1x8x72xf32> to vector<8x72xf32>
    %c17_i32_16 = arith.constant 17 : i32
    %52 = tpu.dynamic_rotate %13 by %c17_i32_16 dim 1 : vector<8x256xf32>, i32 -> vector<8x256xf32>
    %53 = vector.broadcast %1 : vector<1x256xf32> to vector<8x256xf32>
    %54 = arith.mulf %52, %53 : vector<8x256xf32>
    %c16_i32_17 = arith.constant 16 : i32
    %55 = tpu.dynamic_rotate %13 by %c16_i32_17 dim 1 : vector<8x256xf32>, i32 -> vector<8x256xf32>
    %56 = vector.broadcast %2 : vector<1x256xf32> to vector<8x256xf32>
    %57 = arith.mulf %55, %56 : vector<8x256xf32>
    %c15_i32_18 = arith.constant 15 : i32
    %58 = tpu.dynamic_rotate %13 by %c15_i32_18 dim 1 : vector<8x256xf32>, i32 -> vector<8x256xf32>
    %59 = vector.broadcast %3 : vector<1x256xf32> to vector<8x256xf32>
    %60 = arith.mulf %58, %59 : vector<8x256xf32>
    %c1_i32_19 = arith.constant 1 : i32
    %61 = tpu.dynamic_rotate %13 by %c1_i32_19 dim 1 : vector<8x256xf32>, i32 -> vector<8x256xf32>
    %62 = vector.broadcast %4 : vector<1x256xf32> to vector<8x256xf32>
    %63 = arith.mulf %61, %62 : vector<8x256xf32>
    %64 = vector.broadcast %5 : vector<1x256xf32> to vector<8x256xf32>
    %65 = arith.mulf %13, %64 : vector<8x256xf32>
    %c255_i32_20 = arith.constant 255 : i32
    %66 = tpu.dynamic_rotate %13 by %c255_i32_20 dim 1 : vector<8x256xf32>, i32 -> vector<8x256xf32>
    %67 = vector.broadcast %6 : vector<1x256xf32> to vector<8x256xf32>
    %68 = arith.mulf %66, %67 : vector<8x256xf32>
    %c241_i32_21 = arith.constant 241 : i32
    %69 = tpu.dynamic_rotate %13 by %c241_i32_21 dim 1 : vector<8x256xf32>, i32 -> vector<8x256xf32>
    %70 = vector.broadcast %7 : vector<1x256xf32> to vector<8x256xf32>
    %71 = arith.mulf %69, %70 : vector<8x256xf32>
    %c240_i32_22 = arith.constant 240 : i32
    %72 = tpu.dynamic_rotate %13 by %c240_i32_22 dim 1 : vector<8x256xf32>, i32 -> vector<8x256xf32>
    %73 = vector.broadcast %8 : vector<1x256xf32> to vector<8x256xf32>
    %74 = arith.mulf %72, %73 : vector<8x256xf32>
    %c239_i32_23 = arith.constant 239 : i32
    %75 = tpu.dynamic_rotate %13 by %c239_i32_23 dim 1 : vector<8x256xf32>, i32 -> vector<8x256xf32>
    %76 = vector.broadcast %9 : vector<1x256xf32> to vector<8x256xf32>
    %77 = arith.mulf %75, %76 : vector<8x256xf32>
    %78 = tpu.concatenate %54, %57, %60, %63, %65, %68, %71, %74, %77 in 0 : vector<8x256xf32>, vector<8x256xf32>, vector<8x256xf32>, vector<8x256xf32>, vector<8x256xf32>, vector<8x256xf32>, vector<8x256xf32>, vector<8x256xf32>, vector<8x256xf32> -> vector<72x256xf32>
    %c1_24 = arith.constant 1 : index
    %c0_25 = arith.constant 0 : index
    %c0_26 = arith.constant 0 : index
    %79 = vector.load %arg5[%c1_24, %c0_25, %c0_26] : memref<2x8x1xf32, #tpu.memory_space<vmem>>, vector<1x8x1xf32>
    %80 = vector.shape_cast %79 : vector<1x8x1xf32> to vector<8x1xf32>
    %cst_27 = arith.constant dense<0.000000e+00> : vector<8x256xf32>
    %81 = tpu.matmul %51, %78, %cst_27 {dimension_numbers = #tpu.dot_dimension_numbers<[1], [0], [0], [1], [0, 0, 1, 1], [], []>} : vector<8x72xf32>, vector<72x256xf32>, vector<8x256xf32> -> vector<8x256xf32>
    %82 = vector.broadcast %80 : vector<8x1xf32> to vector<8x256xf32>
    %83 = arith.addf %81, %82 : vector<8x256xf32>
    %cst_28 = arith.constant 0.000000e+00 : f32
    %84 = vector.broadcast %cst_28 : f32 to vector<8x256xf32>
    %85 = arith.maximumf %83, %84 : vector<8x256xf32>
    %86 = vector.shape_cast %49 : vector<8x256xf32> to vector<1x8x256xf32>
    %c0_29 = arith.constant 0 : index
    %c0_30 = arith.constant 0 : index
    %c0_31 = arith.constant 0 : index
    %87 = vector.load %arg13[%c0_29, %c0_30, %c0_31] : memref<1x8x256xf32, #tpu.memory_space<vmem>>, vector<1x8x256xf32>
    tpu.vector_store %arg13[%c0_29, %c0_30, %c0_31], %86 {strides = array<i32>} : memref<1x8x256xf32, #tpu.memory_space<vmem>>, vector<1x8x256xf32>,
    %88 = vector.shape_cast %85 : vector<8x256xf32> to vector<1x8x256xf32>
    %c0_32 = arith.constant 0 : index
    %c0_33 = arith.constant 0 : index
    %c0_34 = arith.constant 0 : index
    %89 = vector.load %arg14[%c0_32, %c0_33, %c0_34] : memref<1x8x256xf32, #tpu.memory_space<vmem>>, vector<1x8x256xf32>
    tpu.vector_store %arg14[%c0_32, %c0_33, %c0_34], %88 {strides = array<i32>} : memref<1x8x256xf32, #tpu.memory_space<vmem>>, vector<1x8x256xf32>,
    %c17_i32_35 = arith.constant 17 : i32
    %90 = tpu.dynamic_rotate %49 by %c17_i32_35 dim 1 : vector<8x256xf32>, i32 -> vector<8x256xf32>
    %91 = vector.broadcast %1 : vector<1x256xf32> to vector<8x256xf32>
    %92 = arith.mulf %90, %91 : vector<8x256xf32>
    %c16_i32_36 = arith.constant 16 : i32
    %93 = tpu.dynamic_rotate %49 by %c16_i32_36 dim 1 : vector<8x256xf32>, i32 -> vector<8x256xf32>
    %94 = vector.broadcast %2 : vector<1x256xf32> to vector<8x256xf32>
    %95 = arith.mulf %93, %94 : vector<8x256xf32>
    %c15_i32_37 = arith.constant 15 : i32
    %96 = tpu.dynamic_rotate %49 by %c15_i32_37 dim 1 : vector<8x256xf32>, i32 -> vector<8x256xf32>
    %97 = vector.broadcast %3 : vector<1x256xf32> to vector<8x256xf32>
    %98 = arith.mulf %96, %97 : vector<8x256xf32>
    %c1_i32_38 = arith.constant 1 : i32
    %99 = tpu.dynamic_rotate %49 by %c1_i32_38 dim 1 : vector<8x256xf32>, i32 -> vector<8x256xf32>
    %100 = vector.broadcast %4 : vector<1x256xf32> to vector<8x256xf32>
    %101 = arith.mulf %99, %100 : vector<8x256xf32>
    %102 = vector.broadcast %5 : vector<1x256xf32> to vector<8x256xf32>
    %103 = arith.mulf %49, %102 : vector<8x256xf32>
    %c255_i32_39 = arith.constant 255 : i32
    %104 = tpu.dynamic_rotate %49 by %c255_i32_39 dim 1 : vector<8x256xf32>, i32 -> vector<8x256xf32>
    %105 = vector.broadcast %6 : vector<1x256xf32> to vector<8x256xf32>
    %106 = arith.mulf %104, %105 : vector<8x256xf32>
    %c241_i32_40 = arith.constant 241 : i32
    %107 = tpu.dynamic_rotate %49 by %c241_i32_40 dim 1 : vector<8x256xf32>, i32 -> vector<8x256xf32>
    %108 = vector.broadcast %7 : vector<1x256xf32> to vector<8x256xf32>
    %109 = arith.mulf %107, %108 : vector<8x256xf32>
    %c240_i32_41 = arith.constant 240 : i32
    %110 = tpu.dynamic_rotate %49 by %c240_i32_41 dim 1 : vector<8x256xf32>, i32 -> vector<8x256xf32>
    %111 = vector.broadcast %8 : vector<1x256xf32> to vector<8x256xf32>
    %112 = arith.mulf %110, %111 : vector<8x256xf32>
    %c239_i32_42 = arith.constant 239 : i32
    %113 = tpu.dynamic_rotate %49 by %c239_i32_42 dim 1 : vector<8x256xf32>, i32 -> vector<8x256xf32>
    %114 = vector.broadcast %9 : vector<1x256xf32> to vector<8x256xf32>
    %115 = arith.mulf %113, %114 : vector<8x256xf32>
    %116 = tpu.concatenate %92, %95, %98, %101, %103, %106, %109, %112, %115 in 0 : vector<8x256xf32>, vector<8x256xf32>, vector<8x256xf32>, vector<8x256xf32>, vector<8x256xf32>, vector<8x256xf32>, vector<8x256xf32>, vector<8x256xf32>, vector<8x256xf32> -> vector<72x256xf32>
    %c17_i32_43 = arith.constant 17 : i32
    %117 = tpu.dynamic_rotate %85 by %c17_i32_43 dim 1 : vector<8x256xf32>, i32 -> vector<8x256xf32>
    %118 = vector.broadcast %1 : vector<1x256xf32> to vector<8x256xf32>
    %119 = arith.mulf %117, %118 : vector<8x256xf32>
    %c16_i32_44 = arith.constant 16 : i32
    %120 = tpu.dynamic_rotate %85 by %c16_i32_44 dim 1 : vector<8x256xf32>, i32 -> vector<8x256xf32>
    %121 = vector.broadcast %2 : vector<1x256xf32> to vector<8x256xf32>
    %122 = arith.mulf %120, %121 : vector<8x256xf32>
    %c15_i32_45 = arith.constant 15 : i32
    %123 = tpu.dynamic_rotate %85 by %c15_i32_45 dim 1 : vector<8x256xf32>, i32 -> vector<8x256xf32>
    %124 = vector.broadcast %3 : vector<1x256xf32> to vector<8x256xf32>
    %125 = arith.mulf %123, %124 : vector<8x256xf32>
    %c1_i32_46 = arith.constant 1 : i32
    %126 = tpu.dynamic_rotate %85 by %c1_i32_46 dim 1 : vector<8x256xf32>, i32 -> vector<8x256xf32>
    %127 = vector.broadcast %4 : vector<1x256xf32> to vector<8x256xf32>
    %128 = arith.mulf %126, %127 : vector<8x256xf32>
    %129 = vector.broadcast %5 : vector<1x256xf32> to vector<8x256xf32>
    %130 = arith.mulf %85, %129 : vector<8x256xf32>
    %c255_i32_47 = arith.constant 255 : i32
    %131 = tpu.dynamic_rotate %85 by %c255_i32_47 dim 1 : vector<8x256xf32>, i32 -> vector<8x256xf32>
    %132 = vector.broadcast %6 : vector<1x256xf32> to vector<8x256xf32>
    %133 = arith.mulf %131, %132 : vector<8x256xf32>
    %c241_i32_48 = arith.constant 241 : i32
    %134 = tpu.dynamic_rotate %85 by %c241_i32_48 dim 1 : vector<8x256xf32>, i32 -> vector<8x256xf32>
    %135 = vector.broadcast %7 : vector<1x256xf32> to vector<8x256xf32>
    %136 = arith.mulf %134, %135 : vector<8x256xf32>
    %c240_i32_49 = arith.constant 240 : i32
    %137 = tpu.dynamic_rotate %85 by %c240_i32_49 dim 1 : vector<8x256xf32>, i32 -> vector<8x256xf32>
    %138 = vector.broadcast %8 : vector<1x256xf32> to vector<8x256xf32>
    %139 = arith.mulf %137, %138 : vector<8x256xf32>
    %c239_i32_50 = arith.constant 239 : i32
    %140 = tpu.dynamic_rotate %85 by %c239_i32_50 dim 1 : vector<8x256xf32>, i32 -> vector<8x256xf32>
    %141 = vector.broadcast %9 : vector<1x256xf32> to vector<8x256xf32>
    %142 = arith.mulf %140, %141 : vector<8x256xf32>
    %143 = tpu.concatenate %119, %122, %125, %128, %130, %133, %136, %139, %142 in 0 : vector<8x256xf32>, vector<8x256xf32>, vector<8x256xf32>, vector<8x256xf32>, vector<8x256xf32>, vector<8x256xf32>, vector<8x256xf32>, vector<8x256xf32>, vector<8x256xf32> -> vector<72x256xf32>
    %144 = arith.addf %116, %143 : vector<72x256xf32>
    %145 = arith.addf %49, %85 : vector<8x256xf32>
    %c0_51 = arith.constant 0 : index
    %c0_52 = arith.constant 0 : index
    %c0_53 = arith.constant 0 : index
    %146 = vector.load %arg6[%c0_51, %c0_52, %c0_53] : memref<4x8x72xf32, #tpu.memory_space<vmem>>, vector<1x8x72xf32>
    %147 = vector.shape_cast %146 : vector<1x8x72xf32> to vector<8x72xf32>
    %c0_54 = arith.constant 0 : index
    %c0_55 = arith.constant 0 : index
    %c0_56 = arith.constant 0 : index
    %148 = vector.load %arg7[%c0_54, %c0_55, %c0_56] : memref<4x8x1xf32, #tpu.memory_space<vmem>>, vector<1x8x1xf32>
    %149 = vector.shape_cast %148 : vector<1x8x1xf32> to vector<8x1xf32>
    %cst_57 = arith.constant dense<0.000000e+00> : vector<8x256xf32>
    %150 = tpu.matmul %147, %116, %cst_57 {dimension_numbers = #tpu.dot_dimension_numbers<[1], [0], [0], [1], [0, 0, 1, 1], [], []>} : vector<8x72xf32>, vector<72x256xf32>, vector<8x256xf32> -> vector<8x256xf32>
    %151 = vector.broadcast %149 : vector<8x1xf32> to vector<8x256xf32>
    %152 = arith.addf %150, %151 : vector<8x256xf32>
    %cst_58 = arith.constant 0.166666672 : f32
    %153 = vector.broadcast %cst_58 : f32 to vector<8x256xf32>
    %154 = arith.mulf %152, %153 : vector<8x256xf32>
    %cst_59 = arith.constant 5.000000e-01 : f32
    %155 = vector.broadcast %cst_59 : f32 to vector<8x256xf32>
    %156 = arith.addf %154, %155 : vector<8x256xf32>
    %cst_60 = arith.constant 0.000000e+00 : f32
    %cst_61 = arith.constant 1.000000e+00 : f32
    %157 = vector.broadcast %cst_60 : f32 to vector<8x256xf32>
    %158 = arith.maximumf %157, %156 : vector<8x256xf32>
    %159 = vector.broadcast %cst_61 : f32 to vector<8x256xf32>
    %160 = arith.minimumf %159, %158 : vector<8x256xf32>
    %161 = arith.mulf %49, %160 : vector<8x256xf32>
    %c1_62 = arith.constant 1 : index
    %c0_63 = arith.constant 0 : index
    %c0_64 = arith.constant 0 : index
    %162 = vector.load %arg6[%c1_62, %c0_63, %c0_64] : memref<4x8x72xf32, #tpu.memory_space<vmem>>, vector<1x8x72xf32>
    %163 = vector.shape_cast %162 : vector<1x8x72xf32> to vector<8x72xf32>
    %c1_65 = arith.constant 1 : index
    %c0_66 = arith.constant 0 : index
    %c0_67 = arith.constant 0 : index
    %164 = vector.load %arg7[%c1_65, %c0_66, %c0_67] : memref<4x8x1xf32, #tpu.memory_space<vmem>>, vector<1x8x1xf32>
    %165 = vector.shape_cast %164 : vector<1x8x1xf32> to vector<8x1xf32>
    %cst_68 = arith.constant dense<0.000000e+00> : vector<8x256xf32>
    %166 = tpu.matmul %163, %143, %cst_68 {dimension_numbers = #tpu.dot_dimension_numbers<[1], [0], [0], [1], [0, 0, 1, 1], [], []>} : vector<8x72xf32>, vector<72x256xf32>, vector<8x256xf32> -> vector<8x256xf32>
    %167 = vector.broadcast %165 : vector<8x1xf32> to vector<8x256xf32>
    %168 = arith.addf %166, %167 : vector<8x256xf32>
    %cst_69 = arith.constant 0.166666672 : f32
    %169 = vector.broadcast %cst_69 : f32 to vector<8x256xf32>
    %170 = arith.mulf %168, %169 : vector<8x256xf32>
    %cst_70 = arith.constant 5.000000e-01 : f32
    %171 = vector.broadcast %cst_70 : f32 to vector<8x256xf32>
    %172 = arith.addf %170, %171 : vector<8x256xf32>
    %cst_71 = arith.constant 0.000000e+00 : f32
    %cst_72 = arith.constant 1.000000e+00 : f32
    %173 = vector.broadcast %cst_71 : f32 to vector<8x256xf32>
    %174 = arith.maximumf %173, %172 : vector<8x256xf32>
    %175 = vector.broadcast %cst_72 : f32 to vector<8x256xf32>
    %176 = arith.minimumf %175, %174 : vector<8x256xf32>
    %177 = arith.mulf %85, %176 : vector<8x256xf32>
    %c2 = arith.constant 2 : index
    %c0_73 = arith.constant 0 : index
    %c0_74 = arith.constant 0 : index
    %178 = vector.load %arg6[%c2, %c0_73, %c0_74] : memref<4x8x72xf32, #tpu.memory_space<vmem>>, vector<1x8x72xf32>
    %179 = vector.shape_cast %178 : vector<1x8x72xf32> to vector<8x72xf32>
    %c2_75 = arith.constant 2 : index
    %c0_76 = arith.constant 0 : index
    %c0_77 = arith.constant 0 : index
    %180 = vector.load %arg7[%c2_75, %c0_76, %c0_77] : memref<4x8x1xf32, #tpu.memory_space<vmem>>, vector<1x8x1xf32>
    %181 = vector.shape_cast %180 : vector<1x8x1xf32> to vector<8x1xf32>
    %cst_78 = arith.constant dense<0.000000e+00> : vector<8x256xf32>
    %182 = tpu.matmul %179, %144, %cst_78 {dimension_numbers = #tpu.dot_dimension_numbers<[1], [0], [0], [1], [0, 0, 1, 1], [], []>} : vector<8x72xf32>, vector<72x256xf32>, vector<8x256xf32> -> vector<8x256xf32>
    %183 = vector.broadcast %181 : vector<8x1xf32> to vector<8x256xf32>
    %184 = arith.addf %182, %183 : vector<8x256xf32>
    %cst_79 = arith.constant 0.166666672 : f32
    %185 = vector.broadcast %cst_79 : f32 to vector<8x256xf32>
    %186 = arith.mulf %184, %185 : vector<8x256xf32>
    %cst_80 = arith.constant 5.000000e-01 : f32
    %187 = vector.broadcast %cst_80 : f32 to vector<8x256xf32>
    %188 = arith.addf %186, %187 : vector<8x256xf32>
    %cst_81 = arith.constant 0.000000e+00 : f32
    %cst_82 = arith.constant 1.000000e+00 : f32
    %189 = vector.broadcast %cst_81 : f32 to vector<8x256xf32>
    %190 = arith.maximumf %189, %188 : vector<8x256xf32>
    %191 = vector.broadcast %cst_82 : f32 to vector<8x256xf32>
    %192 = arith.minimumf %191, %190 : vector<8x256xf32>
    %193 = arith.mulf %145, %192 : vector<8x256xf32>
    %c3 = arith.constant 3 : index
    %c0_83 = arith.constant 0 : index
    %c0_84 = arith.constant 0 : index
    %194 = vector.load %arg6[%c3, %c0_83, %c0_84] : memref<4x8x72xf32, #tpu.memory_space<vmem>>, vector<1x8x72xf32>
    %195 = vector.shape_cast %194 : vector<1x8x72xf32> to vector<8x72xf32>
    %c3_85 = arith.constant 3 : index
    %c0_86 = arith.constant 0 : index
    %c0_87 = arith.constant 0 : index
    %196 = vector.load %arg7[%c3_85, %c0_86, %c0_87] : memref<4x8x1xf32, #tpu.memory_space<vmem>>, vector<1x8x1xf32>
    %197 = vector.shape_cast %196 : vector<1x8x1xf32> to vector<8x1xf32>
    %cst_88 = arith.constant dense<0.000000e+00> : vector<8x256xf32>
    %198 = tpu.matmul %195, %144, %cst_88 {dimension_numbers = #tpu.dot_dimension_numbers<[1], [0], [0], [1], [0, 0, 1, 1], [], []>} : vector<8x72xf32>, vector<72x256xf32>, vector<8x256xf32> -> vector<8x256xf32>
    %199 = vector.broadcast %197 : vector<8x1xf32> to vector<8x256xf32>
    %200 = arith.addf %198, %199 : vector<8x256xf32>
    %cst_89 = arith.constant 0.166666672 : f32
    %201 = vector.broadcast %cst_89 : f32 to vector<8x256xf32>
    %202 = arith.mulf %200, %201 : vector<8x256xf32>
    %cst_90 = arith.constant 5.000000e-01 : f32
    %203 = vector.broadcast %cst_90 : f32 to vector<8x256xf32>
    %204 = arith.addf %202, %203 : vector<8x256xf32>
    %cst_91 = arith.constant 0.000000e+00 : f32
    %cst_92 = arith.constant 1.000000e+00 : f32
    %205 = vector.broadcast %cst_91 : f32 to vector<8x256xf32>
    %206 = arith.maximumf %205, %204 : vector<8x256xf32>
    %207 = vector.broadcast %cst_92 : f32 to vector<8x256xf32>
    %208 = arith.minimumf %207, %206 : vector<8x256xf32>
    %209 = arith.mulf %145, %208 : vector<8x256xf32>
    %c0_93 = arith.constant 0 : index
    %c0_94 = arith.constant 0 : index
    %c0_95 = arith.constant 0 : index
    %210 = vector.load %arg8[%c0_93, %c0_94, %c0_95] : memref<4x8x72xf32, #tpu.memory_space<vmem>>, vector<1x8x72xf32>
    %211 = vector.shape_cast %210 : vector<1x8x72xf32> to vector<8x72xf32>
    %cst_96 = arith.constant dense<0.000000e+00> : vector<8x256xf32>
    %212 = tpu.matmul %211, %116, %cst_96 {dimension_numbers = #tpu.dot_dimension_numbers<[1], [0], [0], [1], [0, 0, 1, 1], [], []>} : vector<8x72xf32>, vector<72x256xf32>, vector<8x256xf32> -> vector<8x256xf32>
    %213 = math.absf %212 : vector<8x256xf32>
    %c1_97 = arith.constant 1 : index
    %c0_98 = arith.constant 0 : index
    %c0_99 = arith.constant 0 : index
    %214 = vector.load %arg8[%c1_97, %c0_98, %c0_99] : memref<4x8x72xf32, #tpu.memory_space<vmem>>, vector<1x8x72xf32>
    %215 = vector.shape_cast %214 : vector<1x8x72xf32> to vector<8x72xf32>
    %cst_100 = arith.constant dense<0.000000e+00> : vector<8x256xf32>
    %216 = tpu.matmul %215, %116, %cst_100 {dimension_numbers = #tpu.dot_dimension_numbers<[1], [0], [0], [1], [0, 0, 1, 1], [], []>} : vector<8x72xf32>, vector<72x256xf32>, vector<8x256xf32> -> vector<8x256xf32>
    %217 = math.absf %216 : vector<8x256xf32>
    %218 = arith.addf %213, %217 : vector<8x256xf32>
    %c2_101 = arith.constant 2 : index
    %c0_102 = arith.constant 0 : index
    %c0_103 = arith.constant 0 : index
    %219 = vector.load %arg8[%c2_101, %c0_102, %c0_103] : memref<4x8x72xf32, #tpu.memory_space<vmem>>, vector<1x8x72xf32>
    %220 = vector.shape_cast %219 : vector<1x8x72xf32> to vector<8x72xf32>
    %cst_104 = arith.constant dense<0.000000e+00> : vector<8x256xf32>
    %221 = tpu.matmul %220, %143, %cst_104 {dimension_numbers = #tpu.dot_dimension_numbers<[1], [0], [0], [1], [0, 0, 1, 1], [], []>} : vector<8x72xf32>, vector<72x256xf32>, vector<8x256xf32> -> vector<8x256xf32>
    %222 = math.absf %221 : vector<8x256xf32>
    %c3_105 = arith.constant 3 : index
    %c0_106 = arith.constant 0 : index
    %c0_107 = arith.constant 0 : index
    %223 = vector.load %arg8[%c3_105, %c0_106, %c0_107] : memref<4x8x72xf32, #tpu.memory_space<vmem>>, vector<1x8x72xf32>
    %224 = vector.shape_cast %223 : vector<1x8x72xf32> to vector<8x72xf32>
    %cst_108 = arith.constant dense<0.000000e+00> : vector<8x256xf32>
    %225 = tpu.matmul %224, %143, %cst_108 {dimension_numbers = #tpu.dot_dimension_numbers<[1], [0], [0], [1], [0, 0, 1, 1], [], []>} : vector<8x72xf32>, vector<72x256xf32>, vector<8x256xf32> -> vector<8x256xf32>
    %226 = math.absf %225 : vector<8x256xf32>
    %227 = arith.addf %222, %226 : vector<8x256xf32>
    %c0_109 = arith.constant 0 : index
    %c0_110 = arith.constant 0 : index
    %c0_111 = arith.constant 0 : index
    %228 = vector.load %arg9[%c0_109, %c0_110, %c0_111] : memref<2x4x72xf32, #tpu.memory_space<vmem>>, vector<1x4x72xf32>
    %229 = vector.shape_cast %228 : vector<1x4x72xf32> to vector<4x72xf32>
    %230 = arith.addf %161, %218 : vector<8x256xf32>
    %231 = arith.addf %230, %193 : vector<8x256xf32>
    %c17_i32_112 = arith.constant 17 : i32
    %232 = tpu.dynamic_rotate %231 by %c17_i32_112 dim 1 : vector<8x256xf32>, i32 -> vector<8x256xf32>
    %233 = vector.broadcast %1 : vector<1x256xf32> to vector<8x256xf32>
    %234 = arith.mulf %232, %233 : vector<8x256xf32>
    %c16_i32_113 = arith.constant 16 : i32
    %235 = tpu.dynamic_rotate %231 by %c16_i32_113 dim 1 : vector<8x256xf32>, i32 -> vector<8x256xf32>
    %236 = vector.broadcast %2 : vector<1x256xf32> to vector<8x256xf32>
    %237 = arith.mulf %235, %236 : vector<8x256xf32>
    %c15_i32_114 = arith.constant 15 : i32
    %238 = tpu.dynamic_rotate %231 by %c15_i32_114 dim 1 : vector<8x256xf32>, i32 -> vector<8x256xf32>
    %239 = vector.broadcast %3 : vector<1x256xf32> to vector<8x256xf32>
    %240 = arith.mulf %238, %239 : vector<8x256xf32>
    %c1_i32_115 = arith.constant 1 : i32
    %241 = tpu.dynamic_rotate %231 by %c1_i32_115 dim 1 : vector<8x256xf32>, i32 -> vector<8x256xf32>
    %242 = vector.broadcast %4 : vector<1x256xf32> to vector<8x256xf32>
    %243 = arith.mulf %241, %242 : vector<8x256xf32>
    %244 = vector.broadcast %5 : vector<1x256xf32> to vector<8x256xf32>
    %245 = arith.mulf %231, %244 : vector<8x256xf32>
    %c255_i32_116 = arith.constant 255 : i32
    %246 = tpu.dynamic_rotate %231 by %c255_i32_116 dim 1 : vector<8x256xf32>, i32 -> vector<8x256xf32>
    %247 = vector.broadcast %6 : vector<1x256xf32> to vector<8x256xf32>
    %248 = arith.mulf %246, %247 : vector<8x256xf32>
    %c241_i32_117 = arith.constant 241 : i32
    %249 = tpu.dynamic_rotate %231 by %c241_i32_117 dim 1 : vector<8x256xf32>, i32 -> vector<8x256xf32>
    %250 = vector.broadcast %7 : vector<1x256xf32> to vector<8x256xf32>
    %251 = arith.mulf %249, %250 : vector<8x256xf32>
    %c240_i32_118 = arith.constant 240 : i32
    %252 = tpu.dynamic_rotate %231 by %c240_i32_118 dim 1 : vector<8x256xf32>, i32 -> vector<8x256xf32>
    %253 = vector.broadcast %8 : vector<1x256xf32> to vector<8x256xf32>
    %254 = arith.mulf %252, %253 : vector<8x256xf32>
    %c239_i32_119 = arith.constant 239 : i32
    %255 = tpu.dynamic_rotate %231 by %c239_i32_119 dim 1 : vector<8x256xf32>, i32 -> vector<8x256xf32>
    %256 = vector.broadcast %9 : vector<1x256xf32> to vector<8x256xf32>
    %257 = arith.mulf %255, %256 : vector<8x256xf32>
    %258 = tpu.concatenate %234, %237, %240, %243, %245, %248, %251, %254, %257 in 0 : vector<8x256xf32>, vector<8x256xf32>, vector<8x256xf32>, vector<8x256xf32>, vector<8x256xf32>, vector<8x256xf32>, vector<8x256xf32>, vector<8x256xf32>, vector<8x256xf32> -> vector<72x256xf32>
    %c0_120 = arith.constant 0 : index
    %c0_121 = arith.constant 0 : index
    %c0_122 = arith.constant 0 : index
    %259 = vector.load %arg10[%c0_120, %c0_121, %c0_122] : memref<2x4x1xf32, #tpu.memory_space<vmem>>, vector<1x4x1xf32>
    %260 = vector.shape_cast %259 : vector<1x4x1xf32> to vector<4x1xf32>
    %cst_123 = arith.constant dense<0.000000e+00> : vector<4x256xf32>
    %261 = tpu.matmul %229, %258, %cst_123 {dimension_numbers = #tpu.dot_dimension_numbers<[1], [0], [0], [1], [0, 0, 1, 1], [], []>} : vector<4x72xf32>, vector<72x256xf32>, vector<4x256xf32> -> vector<4x256xf32>
    %262 = vector.broadcast %260 : vector<4x1xf32> to vector<4x256xf32>
    %263 = arith.addf %261, %262 : vector<4x256xf32>
    %cst_124 = arith.constant 0.000000e+00 : f32
    %264 = vector.broadcast %cst_124 : f32 to vector<4x256xf32>
    %265 = arith.maximumf %263, %264 : vector<4x256xf32>
    %c1_125 = arith.constant 1 : index
    %c0_126 = arith.constant 0 : index
    %c0_127 = arith.constant 0 : index
    %266 = vector.load %arg9[%c1_125, %c0_126, %c0_127] : memref<2x4x72xf32, #tpu.memory_space<vmem>>, vector<1x4x72xf32>
    %267 = vector.shape_cast %266 : vector<1x4x72xf32> to vector<4x72xf32>
    %268 = arith.addf %177, %227 : vector<8x256xf32>
    %269 = arith.addf %268, %209 : vector<8x256xf32>
    %c17_i32_128 = arith.constant 17 : i32
    %270 = tpu.dynamic_rotate %269 by %c17_i32_128 dim 1 : vector<8x256xf32>, i32 -> vector<8x256xf32>
    %271 = vector.broadcast %1 : vector<1x256xf32> to vector<8x256xf32>
    %272 = arith.mulf %270, %271 : vector<8x256xf32>
    %c16_i32_129 = arith.constant 16 : i32
    %273 = tpu.dynamic_rotate %269 by %c16_i32_129 dim 1 : vector<8x256xf32>, i32 -> vector<8x256xf32>
    %274 = vector.broadcast %2 : vector<1x256xf32> to vector<8x256xf32>
    %275 = arith.mulf %273, %274 : vector<8x256xf32>
    %c15_i32_130 = arith.constant 15 : i32
    %276 = tpu.dynamic_rotate %269 by %c15_i32_130 dim 1 : vector<8x256xf32>, i32 -> vector<8x256xf32>
    %277 = vector.broadcast %3 : vector<1x256xf32> to vector<8x256xf32>
    %278 = arith.mulf %276, %277 : vector<8x256xf32>
    %c1_i32_131 = arith.constant 1 : i32
    %279 = tpu.dynamic_rotate %269 by %c1_i32_131 dim 1 : vector<8x256xf32>, i32 -> vector<8x256xf32>
    %280 = vector.broadcast %4 : vector<1x256xf32> to vector<8x256xf32>
    %281 = arith.mulf %279, %280 : vector<8x256xf32>
    %282 = vector.broadcast %5 : vector<1x256xf32> to vector<8x256xf32>
    %283 = arith.mulf %269, %282 : vector<8x256xf32>
    %c255_i32_132 = arith.constant 255 : i32
    %284 = tpu.dynamic_rotate %269 by %c255_i32_132 dim 1 : vector<8x256xf32>, i32 -> vector<8x256xf32>
    %285 = vector.broadcast %6 : vector<1x256xf32> to vector<8x256xf32>
    %286 = arith.mulf %284, %285 : vector<8x256xf32>
    %c241_i32_133 = arith.constant 241 : i32
    %287 = tpu.dynamic_rotate %269 by %c241_i32_133 dim 1 : vector<8x256xf32>, i32 -> vector<8x256xf32>
    %288 = vector.broadcast %7 : vector<1x256xf32> to vector<8x256xf32>
    %289 = arith.mulf %287, %288 : vector<8x256xf32>
    %c240_i32_134 = arith.constant 240 : i32
    %290 = tpu.dynamic_rotate %269 by %c240_i32_134 dim 1 : vector<8x256xf32>, i32 -> vector<8x256xf32>
    %291 = vector.broadcast %8 : vector<1x256xf32> to vector<8x256xf32>
    %292 = arith.mulf %290, %291 : vector<8x256xf32>
    %c239_i32_135 = arith.constant 239 : i32
    %293 = tpu.dynamic_rotate %269 by %c239_i32_135 dim 1 : vector<8x256xf32>, i32 -> vector<8x256xf32>
    %294 = vector.broadcast %9 : vector<1x256xf32> to vector<8x256xf32>
    %295 = arith.mulf %293, %294 : vector<8x256xf32>
    %296 = tpu.concatenate %272, %275, %278, %281, %283, %286, %289, %292, %295 in 0 : vector<8x256xf32>, vector<8x256xf32>, vector<8x256xf32>, vector<8x256xf32>, vector<8x256xf32>, vector<8x256xf32>, vector<8x256xf32>, vector<8x256xf32>, vector<8x256xf32> -> vector<72x256xf32>
    %c1_136 = arith.constant 1 : index
    %c0_137 = arith.constant 0 : index
    %c0_138 = arith.constant 0 : index
    %297 = vector.load %arg10[%c1_136, %c0_137, %c0_138] : memref<2x4x1xf32, #tpu.memory_space<vmem>>, vector<1x4x1xf32>
    %298 = vector.shape_cast %297 : vector<1x4x1xf32> to vector<4x1xf32>
    %cst_139 = arith.constant dense<0.000000e+00> : vector<4x256xf32>
    %299 = tpu.matmul %267, %296, %cst_139 {dimension_numbers = #tpu.dot_dimension_numbers<[1], [0], [0], [1], [0, 0, 1, 1], [], []>} : vector<4x72xf32>, vector<72x256xf32>, vector<4x256xf32> -> vector<4x256xf32>
    %300 = vector.broadcast %298 : vector<4x1xf32> to vector<4x256xf32>
    %301 = arith.addf %299, %300 : vector<4x256xf32>
    %cst_140 = arith.constant 0.000000e+00 : f32
    %302 = vector.broadcast %cst_140 : f32 to vector<4x256xf32>
    %303 = arith.maximumf %301, %302 : vector<4x256xf32>
    %304 = vector.shape_cast %265 : vector<4x256xf32> to vector<1x4x256xf32>
    %c0_141 = arith.constant 0 : index
    %c0_142 = arith.constant 0 : index
    %c0_143 = arith.constant 0 : index
    %305 = vector.load %arg11[%c0_141, %c0_142, %c0_143] : memref<1x4x256xf32, #tpu.memory_space<vmem>>, vector<1x4x256xf32>
    tpu.vector_store %arg11[%c0_141, %c0_142, %c0_143], %304 {strides = array<i32>} : memref<1x4x256xf32, #tpu.memory_space<vmem>>, vector<1x4x256xf32>,
    %306 = vector.shape_cast %303 : vector<4x256xf32> to vector<1x4x256xf32>
    %c0_144 = arith.constant 0 : index
    %c0_145 = arith.constant 0 : index
    %c0_146 = arith.constant 0 : index
    %307 = vector.load %arg12[%c0_144, %c0_145, %c0_146] : memref<1x4x256xf32, #tpu.memory_space<vmem>>, vector<1x4x256xf32>
    tpu.vector_store %arg12[%c0_144, %c0_145, %c0_146], %306 {strides = array<i32>} : memref<1x4x256xf32, #tpu.memory_space<vmem>>, vector<1x4x256xf32>,
    return
  }
  func.func @transform_0(%arg0: i32) -> (i32, i32, i32) {
    %c0_i32 = arith.constant 0 : i32
    %c0_i32_0 = arith.constant 0 : i32
    %c0_i32_1 = arith.constant 0 : i32
    return %arg0, %c0_i32, %c0_i32_0 : i32, i32, i32
  }
  func.func @transform_1(%arg0: i32) -> (i32, i32, i32) {
    %c0_i32 = arith.constant 0 : i32
    %c0_i32_0 = arith.constant 0 : i32
    %c0_i32_1 = arith.constant 0 : i32
    return %arg0, %c0_i32, %c0_i32_0 : i32, i32, i32
  }
  func.func @transform_2(%arg0: i32) -> (i32, i32) {
    %c0_i32 = arith.constant 0 : i32
    %c0_i32_0 = arith.constant 0 : i32
    %c0_i32_1 = arith.constant 0 : i32
    return %c0_i32, %c0_i32_0 : i32, i32
  }
  func.func @transform_3(%arg0: i32) -> (i32, i32, i32) {
    %c0_i32 = arith.constant 0 : i32
    %c0_i32_0 = arith.constant 0 : i32
    %c0_i32_1 = arith.constant 0 : i32
    %c0_i32_2 = arith.constant 0 : i32
    return %c0_i32, %c0_i32_0, %c0_i32_1 : i32, i32, i32
  }
  func.func @transform_4(%arg0: i32) -> (i32, i32, i32) {
    %c0_i32 = arith.constant 0 : i32
    %c0_i32_0 = arith.constant 0 : i32
    %c0_i32_1 = arith.constant 0 : i32
    %c0_i32_2 = arith.constant 0 : i32
    return %c0_i32, %c0_i32_0, %c0_i32_1 : i32, i32, i32
  }
  func.func @transform_5(%arg0: i32) -> (i32, i32, i32) {
    %c0_i32 = arith.constant 0 : i32
    %c0_i32_0 = arith.constant 0 : i32
    %c0_i32_1 = arith.constant 0 : i32
    %c0_i32_2 = arith.constant 0 : i32
    return %c0_i32, %c0_i32_0, %c0_i32_1 : i32, i32, i32
  }
  func.func @transform_6(%arg0: i32) -> (i32, i32, i32) {
    %c0_i32 = arith.constant 0 : i32
    %c0_i32_0 = arith.constant 0 : i32
    %c0_i32_1 = arith.constant 0 : i32
    %c0_i32_2 = arith.constant 0 : i32
    return %c0_i32, %c0_i32_0, %c0_i32_1 : i32, i32, i32
  }
  func.func @transform_7(%arg0: i32) -> (i32, i32, i32) {
    %c0_i32 = arith.constant 0 : i32
    %c0_i32_0 = arith.constant 0 : i32
    %c0_i32_1 = arith.constant 0 : i32
    %c0_i32_2 = arith.constant 0 : i32
    return %c0_i32, %c0_i32_0, %c0_i32_1 : i32, i32, i32
  }
  func.func @transform_8(%arg0: i32) -> (i32, i32, i32) {
    %c0_i32 = arith.constant 0 : i32
    %c0_i32_0 = arith.constant 0 : i32
    %c0_i32_1 = arith.constant 0 : i32
    %c0_i32_2 = arith.constant 0 : i32
    return %c0_i32, %c0_i32_0, %c0_i32_1 : i32, i32, i32
  }
  func.func @transform_9(%arg0: i32) -> (i32, i32, i32) {
    %c0_i32 = arith.constant 0 : i32
    %c0_i32_0 = arith.constant 0 : i32
    %c0_i32_1 = arith.constant 0 : i32
    %c0_i32_2 = arith.constant 0 : i32
    return %c0_i32, %c0_i32_0, %c0_i32_1 : i32, i32, i32
  }
  func.func @transform_10(%arg0: i32) -> (i32, i32, i32) {
    %c0_i32 = arith.constant 0 : i32
    %c0_i32_0 = arith.constant 0 : i32
    %c0_i32_1 = arith.constant 0 : i32
    return %arg0, %c0_i32, %c0_i32_0 : i32, i32, i32
  }
  func.func @transform_11(%arg0: i32) -> (i32, i32, i32) {
    %c0_i32 = arith.constant 0 : i32
    %c0_i32_0 = arith.constant 0 : i32
    %c0_i32_1 = arith.constant 0 : i32
    return %arg0, %c0_i32, %c0_i32_0 : i32, i32, i32
  }
  func.func @transform_12(%arg0: i32) -> (i32, i32, i32) {
    %c0_i32 = arith.constant 0 : i32
    %c0_i32_0 = arith.constant 0 : i32
    %c0_i32_1 = arith.constant 0 : i32
    return %arg0, %c0_i32, %c0_i32_0 : i32, i32, i32
  }
  func.func @transform_13(%arg0: i32) -> (i32, i32, i32) {
    %c0_i32 = arith.constant 0 : i32
    %c0_i32_0 = arith.constant 0 : i32
    %c0_i32_1 = arith.constant 0 : i32
    return %arg0, %c0_i32, %c0_i32_0 : i32, i32, i32
  }
}

</mosaic_0001>

<bundles_post_ra>
// kernel: eo_forward.1
= control target key start
LH: loop header
LB: loop body
LE: loop exit
PB: predicated region body
PF: predicated region fallthrough
CT: control target
= control target key end

     0   :  { %s2568_s25 = smov 0   ;;  %s3533_s0 = inlined_call_operand.vmem [shape: f32[2,8,256], index: 0, kind: input, shape index: {}]   ;;  %s3534_s1 = inlined_call_operand.vmem [shape: f32[2,8,256], index: 1, kind: input, shape index: {}]   ;;  %s3535_s2 = inlined_call_operand.vmem [shape: f32[9,256], index: 2, kind: input, shape index: {}]   ;;  %s3536_s3 = inlined_call_operand.vmem [shape: f32[2,8,72], index: 3, kind: input, shape index: {}]   ;;  %s3537_s4 = inlined_call_operand.vmem [shape: f32[2,8,1], index: 4, kind: input, shape index: {}]   ;;  %s3538_s5 = inlined_call_operand.vmem [shape: f32[4,8,72], index: 5, kind: input, shape index: {}]   ;;  %s3539_s6 = inlined_call_operand.vmem [shape: f32[4,8,1], index: 6, kind: input, shape index: {}]   ;;  %s3540_s7 = inlined_call_operand.vmem [shape: f32[4,8,72], index: 7, kind: input, shape index: {}]   ;;  %s3541_s8 = inlined_call_operand.vmem [shape: f32[2,4,72], index: 8, kind: input, shape index: {}]   ;;  %s3542_s9 = inlined_call_operand.vmem [shape: f32[2,4,1], index: 9, kind: input, shape index: {}]   ;;  %s3543_s10 = inlined_call_operand.vmem [shape: f32[2,4,256], index: 10, kind: output, shape index: {0}]   ;;  %s3544_s11 = inlined_call_operand.vmem [shape: f32[2,4,256], index: 11, kind: output, shape index: {1}]   ;;  %s3545_s12 = inlined_call_operand.vmem [shape: f32[2,8,256], index: 12, kind: output, shape index: {2}]   ;;  %s3546_s13 = inlined_call_operand.vmem [shape: f32[2,8,256], index: 13, kind: output, shape index: {3}]  }
   0x1 LB: > { %s2214_s26 = sadd.s32 4294967295, %s2486_s25   ;;  %p2218_p0 = scmp.ge.s32.totalorder %s2486_s25, 1  ;;  %s2486_s25 = sphi %s2568_s25, %s24_s25  }
   0x2   : > { %p404_p1 = scmp.lt.s32.totalorder %s2486_s25, 3 }
   0x4   : > { %p405_p2 = pnand %p2218_p0, %p404_p1 }
   0x6   : > { %408 = sbr.rel (%p405_p2) target bundleno = 1249 (0x4e1), region = 60 }
   0xd   : > { %p468_p3 = scmp.lt.s32.totalorder %s2214_s26, 1  ;;  %s2488_s14 = smov 16   ;;  %v3549_v4 = vmov 0.0   ;;  %v2496_v5 = vmov 0   ;;  %v655_v6 = vld [vmem:[%s3537_s4] sm:$0xff]  ;;  %v2235_v7 = vld [vmem:[%s3537_s4 + $0x8] sm:$0xff]  ;;  %v511_v8 = vlaneseq }
   0xe   : > { %s2489_s15 = smov 17   ;;  %s2490_s19 = smov 15   ;;  %729 = vmatprep.mubr.f32.mxu0 %v3549_v4  ;;  %880 = vmatprep.mubr.f32.mxu1 %v3549_v4  ;;  %v2678_v13 = vld [vmem:[%s3535_s2 + $0x8] sm:$0xff]  ;;  %v2683_v14 = vld [vmem:[%s3535_s2] sm:$0xff]  ;;  %vm661_vm8 = vcmask 588800  }
   0xf   : > { %s3622_s26 = smov (!%p468_p3, %s2214_s26), 1  ;;  %s2491_s20 = smov 1   ;;  %2476 = vset.pattern.permute.xlu0 %v2496_v5  ;;  %2477 = vset.pattern.permute.xlu1 %v2496_v5  ;;  %v2669_v9 = vshrl.u32 %v511_v8, 7  ;;  %v2671_v10 = vand.u32 127, %v511_v8 }
  0x10   : > { %s2579_s27 = sshll.u32 %s3622_s26, 4  ;;  %s2492_s21 = smov 127  }
  0x11   : > { %s472_s30 = scalar_lea.vmem %s3533_s0, %s2579_s27  ;;  %s477_s18 = scalar_lea.vmem %s3534_s1, %s2579_s27  ;;  %v518_v11 = vsub.s32 0, %v2669_v9  ;;  %v535_v12 = vsub.s32 1, %v2669_v9  ;;  %vm530_vm0 = vcmp.lt.s32.totalorder %v2671_v10, 16  ;;  %vm513_vm1 = vcmp.lt.s32.totalorder %v2671_v10, 17 }
  0x12   : > { %v2585_v0 = vld [vmem:[%s472_s30] sm:$0xff]  ;;  %v2591_v1 = vld [vmem:[%s472_s30 + $0x8] sm:$0xff]  ;;  %s2493_s22 = smov 113   ;;  %s3547_s23 = smov 112   ;;  %v552_v41 = vsub.s32 2, %v2669_v9  ;;  %v569_v42 = vsub.s32 3, %v2669_v9 }
  0x13   : > { %526 = vrot.lane.b32.xlu1 %v2585_v0, %s2488_s14  ;;  %507 = vrot.lane.b32.xlu0 %v2585_v0, %s2489_s15  ;;  %v2601_v2 = vld [vmem:[%s477_s18 + $0x8] sm:$0xff]  ;;  %v2603_v3 = vld [vmem:[%s477_s18] sm:$0xff]  ;;  %s2497_s24 = smov 111   ;;  %v2688_v17 = vrot.slane %v2678_v13, %v518_v11  ;;  %v2691_v18 = vrot.slane %v2678_v13, %v535_v12  ;;  %v2694_v19 = vrot.slane %v2683_v14, %v518_v11  ;;  %vm547_vm2 = vcmp.lt.s32.totalorder %v2671_v10, 15  ;;  %s492_s28 = scalar_lea.vmem %s3545_s12, %s2579_s27 }
  0x14   : > { %v2697_v20 = vrot.slane %v2683_v14, %v535_v12  ;;  %v2727_v51 = vrot.slane %v2683_v14, %v552_v41  ;;  %v2730_v52 = vrot.slane %v2678_v13, %v552_v41  ;;  %vm564_vm3 = vcmp.lt.s32.totalorder %v2671_v10, 1  ;;  %s497_s16 = scalar_lea.vmem %s3546_s13, %s2579_s27  ;;  %s2262_s30 = sshll.u32 %s3622_s26, 3 }
  0x15   : > { %3585 = vst [vmem:[#allocation2_spill] sm:$0xff] %v2688_v17  ;;  %3586 = vst [vmem:[#allocation3_spill] sm:$0xff] %v2691_v18  ;;  %v2734_v53 = vrot.slane %v2683_v14, %v569_v42  ;;  %v2737_v54 = vrot.slane %v2678_v13, %v569_v42  ;;  %v579_v12 = vsub.s32 4, %v2669_v9  ;;  %vm591_vm4 = vcmp.lt.s32.totalorder %v2671_v10, 127  ;;  %s487_s26 = scalar_lea.vmem %s3544_s11, %s2262_s30 }
  0x16   : > { %3587 = vst [vmem:[#allocation4_spill] sm:$0xff] %v2694_v19  ;;  %3588 = vst [vmem:[#allocation5_spill] sm:$0xff] %v2697_v20  ;;  %vm608_vm5 = vcmp.lt.s32.totalorder %v2671_v10, 113  ;;  %vm625_vm6 = vcmp.lt.s32.totalorder %v2671_v10, 112  ;;  %vm642_vm7 = vcmp.lt.s32.totalorder %v2671_v10, 111 }
  0x17   : > { %528 = vrot.lane.b32.xlu1 %v2591_v1, %s2488_s14  ;;  %509 = vrot.lane.b32.xlu0 %v2591_v1, %s2489_s15  ;;  %3589 = vst [vmem:[#allocation6_spill] sm:$0xff] %v2727_v51  ;;  %3590 = vst [vmem:[#allocation7_spill] sm:$0xff] %v2730_v52 }
  0x18   : > { %3591 = vst [vmem:[#allocation8_spill] sm:$0xff] %v2734_v53  ;;  %3592 = vst [vmem:[#allocation9_spill] sm:$0xff] %v2737_v54 }
  0x1b   : > { %742 = vrot.lane.b32.xlu1 %v2601_v2, %s2489_s15  ;;  %740 = vrot.lane.b32.xlu0 %v2603_v3, %s2489_s15 }
  0x1f   : > { %750 = vrot.lane.b32.xlu1 %v2601_v2, %s2488_s14  ;;  %748 = vrot.lane.b32.xlu0 %v2603_v3, %s2488_s14 }
  0x23   : > { %545 = vrot.lane.b32.xlu1 %v2591_v1, %s2490_s19  ;;  %543 = vrot.lane.b32.xlu0 %v2585_v0, %s2490_s19 }
  0x27   : > { %562 = vrot.lane.b32.xlu1 %v2591_v1, %s2491_s20  ;;  %560 = vrot.lane.b32.xlu0 %v2585_v0, %s2491_s20 }
  0x2b   : > { %758 = vrot.lane.b32.xlu1 %v2601_v2, %s2490_s19  ;;  %756 = vrot.lane.b32.xlu0 %v2603_v3, %s2490_s19 }
  0x2f   : > { %766 = vrot.lane.b32.xlu1 %v2601_v2, %s2491_s20  ;;  %764 = vrot.lane.b32.xlu0 %v2603_v3, %s2491_s20 }
  0x33   : > { %589 = vrot.lane.b32.xlu1 %v2591_v1, %s2492_s21  ;;  %587 = vrot.lane.b32.xlu0 %v2585_v0, %s2492_s21 }
  0x37   : > { %776 = vrot.lane.b32.xlu1 %v2601_v2, %s2492_s21  ;;  %774 = vrot.lane.b32.xlu0 %v2603_v3, %s2492_s21 }
  0x3b   : > { %606 = vrot.lane.b32.xlu1 %v2591_v1, %s2493_s22  ;;  %604 = vrot.lane.b32.xlu0 %v2585_v0, %s2493_s22 }
  0x3f   : > { %623 = vrot.lane.b32.xlu1 %v2591_v1, %s3547_s23  ;;  %621 = vrot.lane.b32.xlu0 %v2585_v0, %s3547_s23 }
  0x43   : > { %784 = vrot.lane.b32.xlu1 %v2601_v2, %s2493_s22  ;;  %782 = vrot.lane.b32.xlu0 %v2603_v3, %s2493_s22 }
  0x47   : > { %792 = vrot.lane.b32.xlu1 %v2601_v2, %s3547_s23  ;;  %790 = vrot.lane.b32.xlu0 %v2603_v3, %s3547_s23 }
  0x4b   : > { %640 = vrot.lane.b32.xlu1 %v2591_v1, %s2497_s24  ;;  %638 = vrot.lane.b32.xlu0 %v2585_v0, %s2497_s24 }
  0x4f   : > { %800 = vrot.lane.b32.xlu1 %v2601_v2, %s2497_s24  ;;  %798 = vrot.lane.b32.xlu0 %v2603_v3, %s2497_s24 }
  0x53   : > { %658 = vperm.xlu0 %2476, %v655_v6   ;;  %810 = vperm.xlu1 %2477, %v2235_v7  }
  0x85   : > { %v527_v15 = vpop.permute.xlu1 %526  ;;  %v508_v16 = vpop.permute.xlu0 %507 }
  0x89   : > { %v529_v21 = vpop.permute.xlu1 %528  ;;  %v510_v22 = vpop.permute.xlu0 %509 }
  0x8a   : > { %v532_v23 = vsel %vm530_vm0, %v529_v21, %v527_v15  ;;  %v515_v24 = vsel %vm513_vm1, %v510_v22, %v508_v16  ;;  %v514_v25 = vsel %vm513_vm1, %v508_v16, %v510_v22  ;;  %v531_v26 = vsel %vm530_vm0, %v527_v15, %v529_v21 }
  0x8b   : > { %v525_v27 = vmul.f32 %v2688_v17, %v514_v25  ;;  %v542_v28 = vmul.f32 %v2691_v18, %v531_v26  ;;  %v524_v29 = vmul.f32 %v2694_v19, %v515_v24  ;;  %v541_v30 = vmul.f32 %v2697_v20, %v532_v23 }
  0x8c   : > { %v596_v15 = vsub.s32 5, %v2669_v9  ;;  %v2759_v24 = vrot.slane %v2678_v13, %v579_v12  ;;  %v2762_v25 = vrot.slane %v2683_v14, %v579_v12 }
  0x8d   : > { %v743_v31 = vpop.permute.xlu1 %742  ;;  %v741_v32 = vpop.permute.xlu0 %740  ;;  %v2266_v33 = vpack.c.bf16 %v542_v28, %v525_v27  ;;  %v2268_v34 = vpack.c.bf16 %v541_v30, %v524_v29 }
  0x8e   : > { %v745_v35 = vsel %vm513_vm1, %v743_v31, %v741_v32  ;;  %v744_v36 = vsel %vm513_vm1, %v741_v32, %v743_v31  ;;  %3593 = vst [vmem:[#allocation10_spill] sm:$0xff] %v2759_v24  ;;  %3594 = vst [vmem:[#allocation11_spill] sm:$0xff] %v2762_v25  ;;  %v2769_v28 = vrot.slane %v2683_v14, %v596_v15 }
  0x8f   : > { %2267 = vmatprep.subr.bf16.mxu0 %v2266_v33  ;;  %v747_v44 = vmul.f32 %v744_v36, %v2688_v17  ;;  %v746_v46 = vmul.f32 %v745_v35, %v2694_v19  ;;  %v2772_v29 = vrot.slane %v2678_v13, %v596_v15 }
  0x90   : > { %2269 = vmatpush1.bf16.msra.mxu0 %v2268_v34  ;;  %3595 = vst [vmem:[#allocation12_spill] sm:$0xff] %v2769_v28 }
  0x91   : > { %v751_v37 = vpop.permute.xlu1 %750  ;;  %v749_v38 = vpop.permute.xlu0 %748  ;;  %3596 = vst [vmem:[#allocation13_spill] sm:$0xff] %v2772_v29 }
  0x92   : > { %v752_v39 = vsel %vm530_vm0, %v749_v38, %v751_v37  ;;  %v753_v40 = vsel %vm530_vm0, %v751_v37, %v749_v38  ;;  %v586_v38 = vmul.f32 %v2759_v24, %v2591_v1  ;;  %v773_v1 = vmul.f32 %v2759_v24, %v2601_v2 }
  0x93   : > { %v754_v43 = vmul.f32 %v753_v40, %v2697_v20  ;;  %v755_v45 = vmul.f32 %v752_v39, %v2691_v18  ;;  %v585_v39 = vmul.f32 %v2762_v25, %v2585_v0  ;;  %v772_v0 = vmul.f32 %v2762_v25, %v2603_v3 }
  0x95   : > { %v546_v47 = vpop.permute.xlu1 %545  ;;  %v544_v48 = vpop.permute.xlu0 %543  ;;  %v2282_v49 = vpack.c.bf16 %v755_v45, %v747_v44  ;;  %v2284_v50 = vpack.c.bf16 %v754_v43, %v746_v46 }
  0x96   : > { %v548_v55 = vsel %vm547_vm2, %v544_v48, %v546_v47  ;;  %v549_v56 = vsel %vm547_vm2, %v546_v47, %v544_v48 }
  0x97   : > { %2283 = vmatprep.subr.bf16.mxu1 %v2282_v49  ;;  %v558_v61 = vmul.f32 %v2727_v51, %v549_v56  ;;  %v559_v62 = vmul.f32 %v2730_v52, %v548_v55 }
  0x98   : > { %2285 = vmatpush1.bf16.msra.mxu1 %v2284_v50  ;;  %v613_v50 = vsub.s32 6, %v2669_v9 }
  0x99   : > { %v563_v57 = vpop.permute.xlu1 %562  ;;  %v561_v58 = vpop.permute.xlu0 %560 }
  0x9a   : > { %v565_v59 = vsel %vm564_vm3, %v561_v58, %v563_v57  ;;  %v566_v60 = vsel %vm564_vm3, %v563_v57, %v561_v58  ;;  %v630_v57 = vsub.s32 7, %v2669_v9 }
  0x9b   : > { %v575_v63 = vmul.f32 %v2734_v53, %v566_v60  ;;  %v576_v5 = vmul.f32 %v2737_v54, %v565_v59  ;;  %v2802_v60 = vrot.slane %v2683_v14, %v613_v50 }
  0x9c   : > { %v2812_v9 = vrot.slane %v2678_v13, %v630_v57 }
  0x9d   : > { %v759_v6 = vpop.permute.xlu1 %758  ;;  %v757_v7 = vpop.permute.xlu0 %756  ;;  %v2270_v8 = vpack.c.bf16 %v576_v5, %v559_v62  ;;  %v2272_v11 = vpack.c.bf16 %v575_v63, %v558_v61  ;;  %v2805_v61 = vrot.slane %v2678_v13, %v613_v50  ;;  %v2809_v62 = vrot.slane %v2683_v14, %v630_v57  ;;  %v2234_v57 = vld [vmem:[%s3536_s3 + $0x8] sm:$0xff] }
  0x9e   : > { %v760_v16 = vsel %vm547_vm2, %v757_v7, %v759_v6  ;;  %v761_v21 = vsel %vm547_vm2, %v759_v6, %v757_v7 }
  0x9f   : > { %2271 = vmatprep.subr.bf16.mxu0 %v2270_v8  ;;  %v762_v30 = vmul.f32 %v761_v21, %v2727_v51  ;;  %v763_v31 = vmul.f32 %v760_v16, %v2730_v52 }
  0xa0   : > { %2273 = vmatpush1.bf16.msra.mxu0 %v2272_v11 }
  0xa1   : > { %v767_v22 = vpop.permute.xlu1 %766  ;;  %v765_v23 = vpop.permute.xlu0 %764 }
  0xa2   : > { %v768_v26 = vsel %vm564_vm3, %v765_v23, %v767_v22  ;;  %v769_v27 = vsel %vm564_vm3, %v767_v22, %v765_v23 }
  0xa3   : > { %v770_v32 = vmul.f32 %v769_v27, %v2734_v53  ;;  %v771_v33 = vmul.f32 %v768_v26, %v2737_v54 }
  0xa5   : > { %v590_v34 = vpop.permute.xlu1 %589  ;;  %v588_v35 = vpop.permute.xlu0 %587  ;;  %v2286_v36 = vpack.c.bf16 %v771_v33, %v763_v31  ;;  %v2288_v37 = vpack.c.bf16 %v770_v32, %v762_v30 }
  0xa6   : > { %v592_v40 = vsel %vm591_vm4, %v588_v35, %v590_v34  ;;  %v593_v41 = vsel %vm591_vm4, %v590_v34, %v588_v35 }
  0xa7   : > { %v602_v42 = vmul.f32 %v2769_v28, %v592_v40  ;;  %v603_v43 = vmul.f32 %v2772_v29, %v593_v41  ;;  %2287 = vmatprep.subr.bf16.mxu1 %v2286_v36 }
  0xa8   : > { %2289 = vmatpush1.bf16.msra.mxu1 %v2288_v37 }
  0xa9   : > { %v777_v44 = vpop.permute.xlu1 %776  ;;  %v775_v45 = vpop.permute.xlu0 %774  ;;  %v2274_v46 = vpack.c.bf16 %v603_v43, %v586_v38  ;;  %v2276_v47 = vpack.c.bf16 %v602_v42, %v585_v39  ;;  %v2842_v38 = vld [vmem:[%s3535_s2 + $0x10] ss:$0 sm:$0xff]  ;;  %v2847_v39 = vld [vmem:[%s3535_s2 + $0x18] ss:$0 sm:$0xff] }
  0xaa   : > { %v778_v48 = vsel %vm591_vm4, %v775_v45, %v777_v44  ;;  %v779_v49 = vsel %vm591_vm4, %v777_v44, %v775_v45 }
  0xab   : > { %v780_v55 = vmul.f32 %v778_v48, %v2769_v28  ;;  %v781_v56 = vmul.f32 %v779_v49, %v2772_v29  ;;  %2275 = vmatprep.subr.bf16.mxu0 %v2274_v46 }
  0xac   : > { %2277 = vmatpush1.bf16.msra.mxu0 %v2276_v47 }
  0xad   : > { %v607_v2 = vpop.permute.xlu1 %606  ;;  %v605_v3 = vpop.permute.xlu0 %604  ;;  %v2290_v58 = vpack.c.bf16 %v781_v56, %v773_v1  ;;  %v2292_v59 = vpack.c.bf16 %v780_v55, %v772_v0  ;;  %v506_v1 = vld [vmem:[%s3536_s3] sm:$0xff] }
  0xae   : > { %v609_v63 = vsel %vm608_vm5, %v605_v3, %v607_v2  ;;  %v610_v5 = vsel %vm608_vm5, %v607_v2, %v605_v3 }
  0xaf   : > { %2291 = vmatprep.subr.bf16.mxu1 %v2290_v58  ;;  %v619_v14 = vmul.f32 %v2802_v60, %v609_v63  ;;  %v620_v13 = vmul.f32 %v2805_v61, %v610_v5 }
  0xb0   : > { %2293 = vmatpush1.bf16.msra.mxu1 %v2292_v59 }
  0xb1   : > { %v624_v6 = vpop.permute.xlu1 %623  ;;  %v622_v7 = vpop.permute.xlu0 %621 }
  0xb2   : > { %v626_v8 = vsel %vm625_vm6, %v622_v7, %v624_v6  ;;  %v627_v11 = vsel %vm625_vm6, %v624_v6, %v622_v7 }
  0xb3   : > { %v636_v12 = vmul.f32 %v2809_v62, %v626_v8  ;;  %v637_v15 = vmul.f32 %v2812_v9, %v627_v11 }
  0xb5   : > { %v785_v16 = vpop.permute.xlu1 %784  ;;  %v783_v21 = vpop.permute.xlu0 %782  ;;  %v2278_v22 = vpack.c.bf16 %v637_v15, %v620_v13  ;;  %v2280_v23 = vpack.c.bf16 %v636_v12, %v619_v14 }
  0xb6   : > { %v786_v26 = vsel %vm608_vm5, %v783_v21, %v785_v16  ;;  %v787_v27 = vsel %vm608_vm5, %v785_v16, %v783_v21  ;;  %v1046_v16 = vld [vmem:[%s3539_s6] sm:$0xff]  ;;  %v2239_v21 = vld [vmem:[%s3539_s6 + $0x8] sm:$0xff] }
  0xb7   : > { %2279 = vmatprep.subr.bf16.mxu0 %v2278_v22  ;;  %v788_v34 = vmul.f32 %v786_v26, %v2802_v60  ;;  %v789_v35 = vmul.f32 %v787_v27, %v2805_v61  ;;  %v2242_v22 = vld [vmem:[%s3539_s6 + $0x10] sm:$0xff] }
  0xb8   : > { %2281 = vmatpush1.bf16.msra.mxu0 %v2280_v23  ;;  %v2245_v23 = vld [vmem:[%s3539_s6 + $0x18] sm:$0xff] }
  0xb9   : > { %v793_v30 = vpop.permute.xlu1 %792  ;;  %v791_v31 = vpop.permute.xlu0 %790 }
  0xba   : > { %v794_v32 = vsel %vm625_vm6, %v791_v31, %v793_v30  ;;  %v795_v33 = vsel %vm625_vm6, %v793_v30, %v791_v31 }
  0xbb   : > { %v796_v36 = vmul.f32 %v794_v32, %v2809_v62  ;;  %v797_v37 = vmul.f32 %v795_v33, %v2812_v9 }
  0xbd   : > { %v641_v40 = vpop.permute.xlu1 %640  ;;  %v639_v41 = vpop.permute.xlu0 %638  ;;  %v2294_v42 = vpack.c.bf16 %v797_v37, %v789_v35  ;;  %v2296_v43 = vpack.c.bf16 %v796_v36, %v788_v34 }
  0xbe   : > { %v643_v44 = vsel %vm642_vm7, %v639_v41, %v641_v40  ;;  %v644_v45 = vsel %vm642_vm7, %v641_v40, %v639_v41 }
  0xbf   : > { %v653_v46 = vmul.f32 %v2842_v38, %v643_v44  ;;  %v654_v47 = vmul.f32 %v2847_v39, %v644_v45  ;;  %2295 = vmatprep.subr.bf16.mxu1 %v2294_v42 }
  0xc0   : > { %2297 = vmatpush1.bf16.msra.mxu1 %v2296_v43 }
  0xc1   : > { %v801_v0 = vpop.permute.xlu1 %800  ;;  %v799_v48 = vpop.permute.xlu0 %798  ;;  %681 = vmatprep.subr.mxu0 %v654_v47 }
  0xc2   : > { %v802_v49 = vsel %vm642_vm7, %v799_v48, %v801_v0  ;;  %v803_v50 = vsel %vm642_vm7, %v801_v0, %v799_v48  ;;  %682 = vmatpush1.msra.mxu0 %v653_v46 }
  0xc3   : > { %v804_v55 = vmul.f32 %v2842_v38, %v802_v49  ;;  %v805_v56 = vmul.f32 %v2847_v39, %v803_v50  ;;  %2233 = vmatmul.mubr.msk.f32.vlgmr.msra.gmra.mrb[0].mxu0 %vm661_vm8, %v506_v1 }
  0xc4   : > { %1119 = vmatprep.mubr.f32.mxu0 %v3549_v4 }
  0xc5   : > { %832 = vmatprep.subr.mxu1 %v805_v56 }
  0xc6   : > { %833 = vmatpush1.msra.mxu1 %v804_v55 }
  0xc7   : > { %2236 = vmatmul.mubr.msk.f32.vlgmr.msra.gmra.mrb[0].mxu1 %vm661_vm8, %v2234_v57 }
  0xc8   : > { %1212 = vmatprep.mubr.f32.mxu1 %v3549_v4 }
  0xd2   : > { %v659_v2 = vpop.permute.xlu0 %658  ;;  %v811_v5 = vpop.permute.xlu1 %810 }
 0x196   : > { %v731_v3 = vpop.f32.mrb[0].mxu0 }
 0x197   : > { %v732_v58 = vadd.f32 %v731_v3, %v659_v2  ;;  %v733_v59 = vpop.f32.mrb[1].mxu0 }
 0x198   : > { %v734_v63 = vadd.f32 %v733_v59, %v659_v2 }
 0x199   : > { %v2875_v6 = vmax.f32 %v732_v58, 0.0 }
 0x19a   : > { %v2877_v7 = vmax.f32 %v734_v63, 0.0  ;;  %v882_v8 = vpop.f32.mrb[0].mxu1 }
 0x19b   : > { %3597 = vst [vmem:[#allocation14_spill] sm:$0xff] %v2875_v6  ;;  %889 = vst [vmem:[%s492_s28] sm:$0xff] %v2875_v6  ;;  %v883_v11 = vadd.f32 %v882_v8, %v811_v5  ;;  %v884_v14 = vpop.f32.mrb[1].mxu1  ;;  %893 = vrot.lane.b32.xlu1 %v2875_v6, %s2489_s15 }
 0x19c   : > { %3598 = vst [vmem:[#allocation15_spill] sm:$0xff] %v2877_v7  ;;  %890 = vst [vmem:[%s492_s28 + $0x8] sm:$0xff] %v2877_v7  ;;  %v885_v13 = vadd.f32 %v884_v14, %v811_v5  ;;  %895 = vrot.lane.b32.xlu0 %v2877_v7, %s2489_s15 }
 0x19d   : > { %v2889_v12 = vmax.f32 %v883_v11, 0.0 }
 0x19e   : > { %v2891_v15 = vmax.f32 %v885_v13, 0.0 }
 0x19f   : > { %3599 = vst [vmem:[#allocation16_spill] sm:$0xff] %v2889_v12  ;;  %891 = vst [vmem:[%s497_s16] sm:$0xff] %v2889_v12  ;;  %901 = vrot.lane.b32.xlu1 %v2875_v6, %s2488_s14 }
 0x1a0   : > { %3600 = vst [vmem:[#allocation17_spill] sm:$0xff] %v2891_v15  ;;  %892 = vst [vmem:[%s497_s16 + $0x8] sm:$0xff] %v2891_v15  ;;  %903 = vrot.lane.b32.xlu0 %v2877_v7, %s2488_s14 }
 0x1a3   : > { %959 = vrot.lane.b32.xlu1 %v2889_v12, %s2489_s15 }
 0x1a4   : > { %961 = vrot.lane.b32.xlu0 %v2891_v15, %s2489_s15 }
 0x1a7   : > { %967 = vrot.lane.b32.xlu1 %v2889_v12, %s2488_s14 }
 0x1a8   : > { %969 = vrot.lane.b32.xlu0 %v2891_v15, %s2488_s14 }
 0x1ab   : > { %909 = vrot.lane.b32.xlu1 %v2875_v6, %s2490_s19 }
 0x1ac   : > { %911 = vrot.lane.b32.xlu0 %v2877_v7, %s2490_s19 }
 0x1af   : > { %917 = vrot.lane.b32.xlu1 %v2875_v6, %s2491_s20 }
 0x1b0   : > { %919 = vrot.lane.b32.xlu0 %v2877_v7, %s2491_s20 }
 0x1b3   : > { %975 = vrot.lane.b32.xlu1 %v2889_v12, %s2490_s19 }
 0x1b4   : > { %977 = vrot.lane.b32.xlu0 %v2891_v15, %s2490_s19 }
 0x1b7   : > { %983 = vrot.lane.b32.xlu1 %v2889_v12, %s2491_s20 }
 0x1b8   : > { %985 = vrot.lane.b32.xlu0 %v2891_v15, %s2491_s20 }
 0x1bb   : > { %927 = vrot.lane.b32.xlu1 %v2875_v6, %s2492_s21 }
 0x1bc   : > { %929 = vrot.lane.b32.xlu0 %v2877_v7, %s2492_s21 }
 0x1bf   : > { %993 = vrot.lane.b32.xlu1 %v2889_v12, %s2492_s21 }
 0x1c0   : > { %995 = vrot.lane.b32.xlu0 %v2891_v15, %s2492_s21 }
 0x1c3   : > { %935 = vrot.lane.b32.xlu1 %v2875_v6, %s2493_s22 }
 0x1c4   : > { %937 = vrot.lane.b32.xlu0 %v2877_v7, %s2493_s22 }
 0x1c7   : > { %943 = vrot.lane.b32.xlu1 %v2875_v6, %s3547_s23 }
 0x1c8   : > { %945 = vrot.lane.b32.xlu0 %v2877_v7, %s3547_s23 }
 0x1cb   : > { %1001 = vrot.lane.b32.xlu1 %v2889_v12, %s2493_s22 }
 0x1cc   : > { %1003 = vrot.lane.b32.xlu0 %v2891_v15, %s2493_s22 }
 0x1cf   : > { %1009 = vrot.lane.b32.xlu1 %v2889_v12, %s3547_s23 }
 0x1d0   : > { %1011 = vrot.lane.b32.xlu0 %v2891_v15, %s3547_s23  ;;  %s3608_s23 = smov 112  }
 0x1d3   : > { %951 = vrot.lane.b32.xlu1 %v2875_v6, %s2497_s24 }
 0x1d4   : > { %953 = vrot.lane.b32.xlu0 %v2877_v7, %s2497_s24 }
 0x1d7   : > { %1017 = vrot.lane.b32.xlu1 %v2889_v12, %s2497_s24 }
 0x1d8   : > { %1019 = vrot.lane.b32.xlu0 %v2891_v15, %s2497_s24 }
 0x1db   : > { %1049 = vperm.xlu1 %2477, %v1046_v16  }
 0x1dc   : > { %1142 = vperm.xlu0 %2476, %v2239_v21  }
 0x1df   : > { %1235 = vperm.xlu1 %2477, %v2242_v22  }
 0x1e0   : > { %1328 = vperm.xlu0 %2476, %v2245_v23  }
 0x20d   : > { %v894_v26 = vpop.permute.xlu1 %893 }
 0x20e   : > { %v896_v27 = vpop.permute.xlu0 %895 }
 0x20f   : > { %v897_v30 = vsel %vm513_vm1, %v894_v26, %v896_v27  ;;  %v898_v31 = vsel %vm513_vm1, %v896_v27, %v894_v26 }
 0x210   : > { %v2976_v36 = vmul.f32 %v898_v31, %v2694_v19  ;;  %v2979_v37 = vmul.f32 %v897_v30, %v2688_v17 }
 0x211   : > { %v902_v32 = vpop.permute.xlu1 %901 }
 0x212   : > { %v904_v33 = vpop.permute.xlu0 %903 }
 0x213   : > { %v905_v34 = vsel %vm530_vm0, %v902_v32, %v904_v33  ;;  %v906_v35 = vsel %vm530_vm0, %v904_v33, %v902_v32 }
 0x214   : > { %v2982_v40 = vmul.f32 %v906_v35, %v2697_v20  ;;  %v2985_v41 = vmul.f32 %v905_v34, %v2691_v18 }
 0x215   : > { %v960_v42 = vpop.permute.xlu1 %959 }
 0x216   : > { %v2989_v43 = vpack.c.bf16 %v2982_v40, %v2976_v36  ;;  %v962_v44 = vpop.permute.xlu0 %961  ;;  %v2993_v45 = vpack.c.bf16 %v2985_v41, %v2979_v37 }
 0x217   : > { %v963_v46 = vsel %vm513_vm1, %v960_v42, %v962_v44  ;;  %v964_v47 = vsel %vm513_vm1, %v962_v44, %v960_v42 }
 0x218   : > { %2299 = vmatprep.subr.bf16.mxu0 %v2993_v45  ;;  %v3006_v50 = vmul.f32 %v964_v47, %v2694_v19  ;;  %v3009_v55 = vmul.f32 %v963_v46, %v2688_v17 }
 0x219   : > { %2301 = vmatpush1.bf16.msra.mxu0 %v2989_v43  ;;  %v968_v1 = vpop.permute.xlu1 %967 }
 0x21a   : > { %v970_v0 = vpop.permute.xlu0 %969 }
 0x21b   : > { %v971_v48 = vsel %vm530_vm0, %v968_v1, %v970_v0  ;;  %v972_v49 = vsel %vm530_vm0, %v970_v0, %v968_v1 }
 0x21c   : > { %v3012_v56 = vmul.f32 %v972_v49, %v2697_v20  ;;  %v3015_v57 = vmul.f32 %v971_v48, %v2691_v18 }
 0x21d   : > { %v910_v2 = vpop.permute.xlu1 %909 }
 0x21e   : > { %v3019_v3 = vpack.c.bf16 %v3012_v56, %v3006_v50  ;;  %v912_v58 = vpop.permute.xlu0 %911  ;;  %v3023_v59 = vpack.c.bf16 %v3015_v57, %v3009_v55 }
 0x21f   : > { %v913_v63 = vsel %vm547_vm2, %v910_v2, %v912_v58  ;;  %v914_v5 = vsel %vm547_vm2, %v912_v58, %v910_v2 }
 0x220   : > { %2315 = vmatprep.subr.bf16.mxu1 %v3023_v59  ;;  %v3036_v16 = vmul.f32 %v914_v5, %v2727_v51  ;;  %v3039_v21 = vmul.f32 %v913_v63, %v2730_v52 }
 0x221   : > { %2317 = vmatpush1.bf16.msra.mxu1 %v3019_v3  ;;  %v918_v8 = vpop.permute.xlu1 %917 }
 0x222   : > { %v920_v11 = vpop.permute.xlu0 %919 }
 0x223   : > { %v921_v14 = vsel %vm564_vm3, %v918_v8, %v920_v11  ;;  %v922_v13 = vsel %vm564_vm3, %v920_v11, %v918_v8  ;;  %v3091_v8 = vmul.f32 %v2875_v6, %v2762_v25 }
 0x224   : > { %v3042_v22 = vmul.f32 %v922_v13, %v2734_v53  ;;  %v3045_v23 = vmul.f32 %v921_v14, %v2737_v54  ;;  %v3102_v13 = vmul.f32 %v2877_v7, %v2759_v24 }
 0x225   : > { %v976_v26 = vpop.permute.xlu1 %975 }
 0x226   : > { %v3049_v27 = vpack.c.bf16 %v3042_v22, %v3036_v16  ;;  %v978_v30 = vpop.permute.xlu0 %977  ;;  %v3053_v31 = vpack.c.bf16 %v3045_v23, %v3039_v21 }
 0x227   : > { %v979_v32 = vsel %vm547_vm2, %v976_v26, %v978_v30  ;;  %v980_v33 = vsel %vm547_vm2, %v978_v30, %v976_v26 }
 0x228   : > { %2303 = vmatprep.subr.bf16.mxu0 %v3053_v31  ;;  %v3066_v46 = vmul.f32 %v980_v33, %v2727_v51  ;;  %v3069_v47 = vmul.f32 %v979_v32, %v2730_v52 }
 0x229   : > { %2305 = vmatpush1.bf16.msra.mxu0 %v3049_v27  ;;  %v984_v34 = vpop.permute.xlu1 %983 }
 0x22a   : > { %v986_v35 = vpop.permute.xlu0 %985 }
 0x22b   : > { %v987_v42 = vsel %vm564_vm3, %v984_v34, %v986_v35  ;;  %v988_v44 = vsel %vm564_vm3, %v986_v35, %v984_v34 }
 0x22c   : > { %v3072_v1 = vmul.f32 %v988_v44, %v2734_v53  ;;  %v3075_v0 = vmul.f32 %v987_v42, %v2737_v54  ;;  %v3119_v42 = vmul.f32 %v2889_v12, %v2762_v25 }
 0x22d   : > { %v928_v48 = vpop.permute.xlu1 %927 }
 0x22e   : > { %v3079_v49 = vpack.c.bf16 %v3072_v1, %v3066_v46  ;;  %v930_v2 = vpop.permute.xlu0 %929  ;;  %v3083_v58 = vpack.c.bf16 %v3075_v0, %v3069_v47 }
 0x22f   : > { %v931_v63 = vsel %vm591_vm4, %v928_v48, %v930_v2  ;;  %v932_v5 = vsel %vm591_vm4, %v930_v2, %v928_v48  ;;  %v3130_v2 = vmul.f32 %v2891_v15, %v2759_v24 }
 0x230   : > { %v3094_v11 = vmul.f32 %v931_v63, %v2769_v28  ;;  %v3097_v14 = vmul.f32 %v932_v5, %v2772_v29  ;;  %2319 = vmatprep.subr.bf16.mxu1 %v3083_v58 }
 0x231   : > { %2321 = vmatpush1.bf16.msra.mxu1 %v3079_v49  ;;  %v994_v26 = vpop.permute.xlu1 %993 }
 0x232   : > { %v3107_v30 = vpack.c.bf16 %v3094_v11, %v3091_v8  ;;  %v996_v32 = vpop.permute.xlu0 %995  ;;  %v3111_v33 = vpack.c.bf16 %v3097_v14, %v3102_v13 }
 0x233   : > { %v997_v34 = vsel %vm591_vm4, %v994_v26, %v996_v32  ;;  %v998_v35 = vsel %vm591_vm4, %v996_v32, %v994_v26 }
 0x234   : > { %v3122_v44 = vmul.f32 %v997_v34, %v2769_v28  ;;  %v3125_v48 = vmul.f32 %v998_v35, %v2772_v29  ;;  %2307 = vmatprep.subr.bf16.mxu0 %v3111_v33 }
 0x235   : > { %v936_v63 = vpop.permute.xlu1 %935  ;;  %2309 = vmatpush1.bf16.msra.mxu0 %v3107_v30 }
 0x236   : > { %v3135_v5 = vpack.c.bf16 %v3122_v44, %v3119_v42  ;;  %v938_v26 = vpop.permute.xlu0 %937  ;;  %v3139_v32 = vpack.c.bf16 %v3125_v48, %v3130_v2 }
 0x237   : > { %v939_v34 = vsel %vm608_vm5, %v936_v63, %v938_v26  ;;  %v940_v35 = vsel %vm608_vm5, %v938_v26, %v936_v63 }
 0x238   : > { %3601 = vst [vmem:[#allocation18_spill] sm:$0xff] %v3135_v5  ;;  %2323 = vmatprep.subr.bf16.mxu1 %v3139_v32  ;;  %v3152_v25 = vmul.f32 %v939_v34, %v2802_v60  ;;  %v3155_v54 = vmul.f32 %v940_v35, %v2805_v61 }
 0x239   : > { %2325 = vmatpush1.bf16.msra.mxu1 %v3135_v5  ;;  %v944_v4 = vpop.permute.xlu1 %943 }
 0x23a   : > { %v946_v24 = vpop.permute.xlu0 %945 }
 0x23b   : > { %v947_v29 = vsel %vm625_vm6, %v944_v4, %v946_v24  ;;  %v948_v28 = vsel %vm625_vm6, %v946_v24, %v944_v4 }
 0x23c   : > { %v3158_v53 = vmul.f32 %v947_v29, %v2809_v62  ;;  %v950_v63 = vmul.f32 %v948_v28, %v2812_v9 }
 0x23d   : > { %v1002_v26 = vpop.permute.xlu1 %1001 }
 0x23e   : > { %v3163_v52 = vpack.c.bf16 %v3158_v53, %v3152_v25  ;;  %v1004_v51 = vpop.permute.xlu0 %1003  ;;  %v3166_v18 = vpack.c.bf16 %v950_v63, %v3155_v54 }
 0x23f   : > { %v1005_v4 = vsel %vm608_vm5, %v1002_v26, %v1004_v51  ;;  %v1006_v24 = vsel %vm608_vm5, %v1004_v51, %v1002_v26  ;;  %v1027_v51 = vadd.f32 %v3012_v56, %v2982_v40  ;;  %v1028_v26 = vadd.f32 %v3015_v57, %v2985_v41 }
 0x240   : > { %2311 = vmatprep.subr.bf16.mxu0 %v3166_v18  ;;  %v1007_v20 = vmul.f32 %v1005_v4, %v2802_v60  ;;  %v1008_v17 = vmul.f32 %v1006_v24, %v2805_v61  ;;  %v1032_v4 = vadd.f32 %v3075_v0, %v3045_v23  ;;  %v1025_v40 = vadd.f32 %v3006_v50, %v2976_v36 }
 0x241   : > { %v1010_v29 = vpop.permute.xlu1 %1009  ;;  %2313 = vmatpush1.bf16.msra.mxu0 %v3163_v52  ;;  %v1026_v41 = vadd.f32 %v3009_v55, %v2979_v37  ;;  %v1030_v23 = vadd.f32 %v3069_v47, %v3039_v21  ;;  %v1031_v55 = vadd.f32 %v3072_v1, %v3042_v22  ;;  %v1029_v22 = vadd.f32 %v3066_v46, %v3036_v16  ;;  %v2238_v1 = vld [vmem:[%s3538_s5 + $0x8] sm:$0xff] }
 0x242   : > { %v1012_v28 = vpop.permute.xlu0 %1011  ;;  %v2332_v36 = vpack.c.bf16 %v1027_v51, %v1025_v40  ;;  %v3602_v51 = vmov 0.0  }
 0x243   : > { %v1013_v34 = vsel %vm625_vm6, %v1010_v29, %v1012_v28  ;;  %v1014_v35 = vsel %vm625_vm6, %v1012_v28, %v1010_v29  ;;  %v2330_v50 = vpack.c.bf16 %v1028_v26, %v1026_v41  ;;  %v2334_v47 = vpack.c.bf16 %v1032_v4, %v1030_v23 }
 0x244   : > { %v1015_v19 = vmul.f32 %v1013_v34, %v2809_v62  ;;  %v1016_v15 = vmul.f32 %v1014_v35, %v2812_v9  ;;  %v1036_v28 = vadd.f32 %v3125_v48, %v3097_v14  ;;  %v1035_v14 = vadd.f32 %v3122_v44, %v3094_v11 }
 0x245   : > { %v952_v7 = vpop.permute.xlu1 %951  ;;  %v1033_v48 = vadd.f32 %v3119_v42, %v3091_v8  ;;  %v1038_v26 = vadd.f32 %v1008_v17, %v3155_v54  ;;  %v2250_v54 = vld [vmem:[%s3540_s7 + $0x10] sm:$0xff] }
 0x246   : > { %v3186_v12 = vpack.c.bf16 %v1015_v19, %v1007_v20  ;;  %v954_v6 = vpop.permute.xlu0 %953  ;;  %v3188_v5 = vpack.c.bf16 %v1016_v15, %v1008_v17  ;;  %v1040_v16 = vadd.f32 %v1016_v15, %v950_v63  ;;  %v1037_v15 = vadd.f32 %v1007_v20, %v3152_v25  ;;  %v2244_v20 = vld [vmem:[%s3538_s5 + $0x18] sm:$0xff] }
 0x247   : > { %v955_v24 = vsel %vm642_vm7, %v952_v7, %v954_v6  ;;  %v956_v29 = vsel %vm642_vm7, %v954_v6, %v952_v7  ;;  %v1045_v7 = vld [vmem:[%s3538_s5] sm:$0xff]  ;;  %v2252_v25 = vld [vmem:[%s3540_s7 + $0x18] sm:$0xff] }
 0x248   : > { %v3201_v56 = vmul.f32 %v2842_v38, %v955_v24  ;;  %v3204_v57 = vmul.f32 %v2847_v39, %v956_v29  ;;  %2327 = vmatprep.subr.bf16.mxu1 %v3188_v5  ;;  %v2342_v11 = vpack.c.bf16 %v1040_v16, %v1038_v26  ;;  %v3605_v26 = vld [vmem:[#allocation16_spill] sm:$0xff] }
 0x249   : > { %2329 = vmatpush1.bf16.msra.mxu1 %v3186_v12  ;;  %v1018_v6 = vpop.permute.xlu1 %1017 }
 0x24a   : > { %v1020_v37 = vpop.permute.xlu0 %1019  ;;  %1071 = vmatprep.subr.mxu0 %v3204_v57 }
 0x24b   : > { %v1021_v0 = vsel %vm642_vm7, %v1018_v6, %v1020_v37  ;;  %v1022_v21 = vsel %vm642_vm7, %v1020_v37, %v1018_v6  ;;  %1072 = vmatpush1.msra.mxu0 %v3201_v56 }
 0x24c   : > { %v3224_v34 = vmul.f32 %v2842_v38, %v1021_v0  ;;  %v3227_v35 = vmul.f32 %v2847_v39, %v1022_v21  ;;  %2237 = vmatmul.mubr.msk.f32.vlgmr.msra.gmra.mrb[2].mxu0 %vm661_vm8, %v1045_v7  ;;  %2331 = vmatprep.subr.bf16.mxu0 %v2330_v50  ;;  %v1034_v38 = vadd.f32 %v3130_v2, %v3102_v13 }
 0x24d   : > { %2333 = vmatpush1.bf16.msra.mxu0 %v2332_v36  ;;  %1305 = vmatprep.mubr.f32.mxu0 %v3602_v51  ;;  %v2336_v39 = vpack.c.bf16 %v1031_v55, %v1029_v22  ;;  %v2340_v13 = vpack.c.bf16 %v1035_v14, %v1033_v48  ;;  %v1039_v2 = vadd.f32 %v1015_v19, %v3158_v53  ;;  %v2241_v19 = vld [vmem:[%s3538_s5 + $0x10] sm:$0xff]  ;;  %v1415_v53 = vld [vmem:[%s3540_s7] sm:$0xff] }
 0x24e   : > { %1164 = vmatprep.subr.mxu1 %v3227_v35  ;;  %2335 = vmatprep.subr.bf16.mxu0 %v2334_v47  ;;  %v2338_v46 = vpack.c.bf16 %v1036_v28, %v1034_v38  ;;  %v1042_v8 = vadd.f32 %v3227_v35, %v3204_v57  ;;  %v1041_v17 = vadd.f32 %v3224_v34, %v3201_v56 }
 0x24f   : > { %1165 = vmatpush1.msra.mxu1 %v3224_v34  ;;  %v2344_v44 = vpack.c.bf16 %v1039_v2, %v1037_v15  ;;  %v3606_v15 = vld [vmem:[#allocation15_spill] sm:$0xff] }
 0x250   : > { %2240 = vmatmul.mubr.msk.f32.vlgmr.msra.gmra.mrb[2].mxu1 %vm661_vm8, %v2238_v1  ;;  %2347 = vmatprep.subr.bf16.mxu1 %v2330_v50 }
 0x251   : > { %2337 = vmatpush1.bf16.msra.mxu0 %v2336_v39  ;;  %2349 = vmatpush1.bf16.msra.mxu1 %v2332_v36 }
 0x252   : > { %2339 = vmatprep.subr.bf16.mxu0 %v2338_v46  ;;  %2351 = vmatprep.subr.bf16.mxu1 %v2334_v47 }
 0x253   : > { %1398 = vmatprep.mubr.f32.mxu1 %v3602_v51 }
 0x255   : > { %2341 = vmatpush1.bf16.msra.mxu0 %v2340_v13  ;;  %2353 = vmatpush1.bf16.msra.mxu1 %v2336_v39 }
 0x256   : > { %2343 = vmatprep.subr.bf16.mxu0 %v2342_v11  ;;  %2355 = vmatprep.subr.bf16.mxu1 %v2338_v46  ;;  %v3604_v46 = vld [vmem:[#allocation14_spill] sm:$0xff] }
 0x259   : > { %2345 = vmatpush1.bf16.msra.mxu0 %v2344_v44  ;;  %2357 = vmatpush1.bf16.msra.mxu1 %v2340_v13  ;;  %v1043_v13 = vadd.f32 %v3605_v26, %v3604_v46 }
 0x25a   : > { %1257 = vmatprep.subr.mxu0 %v1042_v8  ;;  %2359 = vmatprep.subr.bf16.mxu1 %v2342_v11 }
 0x25b   : > { %v1143_v6 = vpop.permute.xlu0 %1142 }
 0x25d   : > { %1258 = vmatpush1.msra.mxu0 %v1041_v17  ;;  %2361 = vmatpush1.bf16.msra.mxu1 %v2344_v44 }
 0x25e   : > { %2243 = vmatmul.mubr.msk.f32.vlgmr.msra.gmra.mrb[4].mxu0 %vm661_vm8, %v2241_v19  ;;  %1350 = vmatprep.subr.mxu1 %v1042_v8  ;;  %v3607_v8 = vld [vmem:[#allocation17_spill] sm:$0xff] }
 0x25f   : > { %2363 = vmatprep.subr.bf16.mxu0 %v2993_v45  ;;  %1483 = vmatprep.mubr.f32.mxu0 %v3602_v51  ;;  %v1329_v38 = vpop.permute.xlu0 %1328 }
 0x260   : > { %2365 = vmatpush1.bf16.msra.mxu0 %v2989_v43 }
 0x261   : > { %2367 = vmatprep.subr.bf16.mxu0 %v3053_v31  ;;  %1351 = vmatpush1.msra.mxu1 %v1041_v17  ;;  %v1044_v17 = vadd.f32 %v3607_v8, %v3606_v15 }
 0x262   : > { %2246 = vmatmul.mubr.msk.f32.vlgmr.msra.gmra.mrb[4].mxu1 %vm661_vm8, %v2244_v20  ;;  %2379 = vmatprep.subr.bf16.mxu1 %v2993_v45 }
 0x263   : > { %2381 = vmatpush1.bf16.msra.mxu1 %v2989_v43  ;;  %1561 = vmatprep.mubr.f32.mxu1 %v3602_v51 }
 0x264   : > { %2369 = vmatpush1.bf16.msra.mxu0 %v3049_v27  ;;  %2383 = vmatprep.subr.bf16.mxu1 %v3053_v31 }
 0x265   : > { %2371 = vmatprep.subr.bf16.mxu0 %v3111_v33 }
 0x267   : > { %2385 = vmatpush1.bf16.msra.mxu1 %v3049_v27 }
 0x268   : > { %2373 = vmatpush1.bf16.msra.mxu0 %v3107_v30  ;;  %2387 = vmatprep.subr.bf16.mxu1 %v3111_v33 }
 0x269   : > { %2375 = vmatprep.subr.bf16.mxu0 %v3166_v18 }
 0x26b   : > { %2389 = vmatpush1.bf16.msra.mxu1 %v3107_v30 }
 0x26c   : > { %2377 = vmatpush1.bf16.msra.mxu0 %v3163_v52  ;;  %2391 = vmatprep.subr.bf16.mxu1 %v3166_v18  ;;  %v2248_v18 = vld [vmem:[%s3540_s7 + $0x8] sm:$0xff] }
 0x26d   : > { %1435 = vmatprep.subr.mxu0 %v3204_v57 }
 0x26f   : > { %2393 = vmatpush1.bf16.msra.mxu1 %v3163_v52  ;;  %v3603_v52 = vld [vmem:[#allocation18_spill] sm:$0xff] }
 0x270   : > { %1436 = vmatpush1.msra.mxu0 %v3201_v56  ;;  %1513 = vmatprep.subr.mxu1 %v3204_v57 }
 0x271   : > { %2395 = vmatprep.subr.bf16.mxu0 %v3023_v59  ;;  %2247 = vmatmul.mubr.msk.f32.vlgmr.msra.gmra.mrb[6].mxu0 %vm661_vm8, %v1415_v53 }
 0x272   : > { %2397 = vmatpush1.bf16.msra.mxu0 %v3019_v3  ;;  %1641 = vmatprep.mubr.f32.mxu0 %v3602_v51 }
 0x273   : > { %2399 = vmatprep.subr.bf16.mxu0 %v3083_v58  ;;  %1514 = vmatpush1.msra.mxu1 %v3201_v56 }
 0x274   : > { %2249 = vmatmul.mubr.msk.f32.vlgmr.msra.gmra.mrb[6].mxu1 %vm661_vm8, %v2248_v18  ;;  %2411 = vmatprep.subr.bf16.mxu1 %v3023_v59  ;;  %v1050_v59 = vpop.permute.xlu1 %1049 }
 0x275   : > { %2413 = vmatpush1.bf16.msra.mxu1 %v3019_v3  ;;  %1719 = vmatprep.mubr.f32.mxu1 %v3602_v51 }
 0x276   : > { %2401 = vmatpush1.bf16.msra.mxu0 %v3079_v49  ;;  %2415 = vmatprep.subr.bf16.mxu1 %v3083_v58 }
 0x277   : > { %2403 = vmatprep.subr.bf16.mxu0 %v3139_v32 }
 0x278   : > { %v1236_v33 = vpop.permute.xlu1 %1235 }
 0x279   : > { %2417 = vmatpush1.bf16.msra.mxu1 %v3079_v49 }
 0x27a   : > { %2405 = vmatpush1.bf16.msra.mxu0 %v3603_v52  ;;  %2419 = vmatprep.subr.bf16.mxu1 %v3139_v32 }
 0x27b   : > { %2407 = vmatprep.subr.bf16.mxu0 %v3188_v5 }
 0x27d   : > { %2421 = vmatpush1.bf16.msra.mxu1 %v3603_v52 }
 0x27e   : > { %2409 = vmatpush1.bf16.msra.mxu0 %v3186_v12  ;;  %2423 = vmatprep.subr.bf16.mxu1 %v3188_v5 }
 0x27f   : > { %1593 = vmatprep.subr.mxu0 %v3227_v35 }
 0x281   : > { %2425 = vmatpush1.bf16.msra.mxu1 %v3186_v12 }
 0x282   : > { %1594 = vmatpush1.msra.mxu0 %v3224_v34  ;;  %1671 = vmatprep.subr.mxu1 %v3227_v35 }
 0x283   : > { %2251 = vmatmul.mubr.msk.f32.vlgmr.msra.gmra.mrb[8].mxu0 %vm661_vm8, %v2250_v54 }
 0x284   : > { %1874 = vmatprep.mubr.f32.mxu0 %v3602_v51 }
 0x285   : > { %1672 = vmatpush1.msra.mxu1 %v3224_v34 }
 0x286   : > { %2253 = vmatmul.mubr.msk.f32.vlgmr.msra.gmra.mrb[8].mxu1 %vm661_vm8, %v2252_v25 }
 0x287   : > { %2029 = vmatprep.mubr.f32.mxu1 %v3602_v51 }
 0x31f   : > { %v1121_v43 = vpop.f32.mrb[2].mxu0 }
 0x320   : > { %v1123_v12 = vpop.f32.mrb[3].mxu0  ;;  %v1122_v58 = vadd.f32 %v1121_v43, %v1050_v59 }
 0x321   : > { %v1124_v42 = vadd.f32 %v1123_v12, %v1050_v59 }
 0x322   : > { %v1126_v63 = vmul.f32 0.16666667, %v1122_v58 }
 0x323   : > { %v1214_v45 = vpop.f32.mrb[2].mxu1  ;;  %v1127_v4 = vmul.f32 0.16666667, %v1124_v42 }
 0x324   : > { %v1216_v3 = vpop.f32.mrb[3].mxu1  ;;  %v1128_v40 = vadd.f32 0.5, %v1126_v63  ;;  %v1215_v35 = vadd.f32 %v1214_v45, %v1143_v6 }
 0x325   : > { %v1129_v41 = vadd.f32 0.5, %v1127_v4  ;;  %v1217_v39 = vadd.f32 %v1216_v3, %v1143_v6 }
 0x326   : > { %v1130_v23 = vmax.f32 %v1128_v40, 0.0  ;;  %v1219_v53 = vmul.f32 0.16666667, %v1215_v35 }
 0x327   : > { %v1131_v7 = vmax.f32 %v1129_v41, 0.0  ;;  %v1220_v54 = vmul.f32 0.16666667, %v1217_v39 }
 0x328   : > { %v1132_v0 = vmin.f32 %v1130_v23, 1.0 }
 0x329   : > { %v1133_v47 = vmin.f32 %v1131_v7, 1.0 }
 0x32a   : > { %v1134_v48 = vmul.f32 %v1132_v0, %v3604_v46 }
 0x32b   : > { %v1135_v44 = vmul.f32 %v1133_v47, %v3606_v15 }
 0x331   : > { %v1307_v27 = vpop.f32.mrb[4].mxu0 }
 0x332   : > { %v1309_v31 = vpop.f32.mrb[5].mxu0  ;;  %v1308_v5 = vadd.f32 %v1307_v27, %v1236_v33  ;;  %v1221_v27 = vadd.f32 0.5, %v1219_v53 }
 0x333   : > { %v1310_v32 = vadd.f32 %v1309_v31, %v1236_v33  ;;  %v1222_v31 = vadd.f32 0.5, %v1220_v54 }
 0x334   : > { %v1312_v24 = vmul.f32 0.16666667, %v1308_v5 }
 0x335   : > { %v1400_v49 = vpop.f32.mrb[4].mxu1  ;;  %v1313_v29 = vmul.f32 0.16666667, %v1310_v32  ;;  %v1224_v33 = vmax.f32 %v1222_v31, 0.0  ;;  %v3613_v31 = vld [vmem:[#allocation6_spill] sm:$0xff] }
 0x336   : > { %v1402_v30 = vpop.f32.mrb[5].mxu1  ;;  %v1314_v56 = vadd.f32 0.5, %v1312_v24  ;;  %v1401_v2 = vadd.f32 %v1400_v49, %v1329_v38 }
 0x337   : > { %v1315_v57 = vadd.f32 0.5, %v1313_v29  ;;  %v1403_v19 = vadd.f32 %v1402_v30, %v1329_v38  ;;  %v1223_v30 = vmax.f32 %v1221_v27, 0.0  ;;  %v1226_v29 = vmin.f32 %v1224_v33, 1.0  ;;  %v3615_v33 = vld [vmem:[#allocation8_spill] sm:$0xff] }
 0x338   : > { %v1316_v36 = vmax.f32 %v1314_v56, 0.0  ;;  %v1405_v12 = vmul.f32 0.16666667, %v1401_v2 }
 0x339   : > { %v1317_v50 = vmax.f32 %v1315_v57, 0.0  ;;  %v1406_v3 = vmul.f32 0.16666667, %v1403_v19  ;;  %v1225_v4 = vmin.f32 %v1223_v30, 1.0 }
 0x33a   : > { %v1318_v22 = vmin.f32 %v1316_v36, 1.0  ;;  %v1407_v49 = vadd.f32 0.5, %v1405_v12 }
 0x33b   : > { %v1319_v14 = vmin.f32 %v1317_v50, 1.0  ;;  %v1408_v58 = vadd.f32 0.5, %v1406_v3  ;;  %v1227_v36 = vmul.f32 %v1225_v4, %v3605_v26  ;;  %v1228_v50 = vmul.f32 %v1226_v29, %v3607_v8 }
 0x33c   : > { %v1320_v18 = vmul.f32 %v1318_v22, %v1043_v13  ;;  %v1409_v42 = vmax.f32 %v1407_v49, 0.0  ;;  %v1801_v22 = vld [vmem:[%s3542_s9] sm:$0xf] }
 0x33d   : > { %v1321_v25 = vmul.f32 %v1319_v14, %v1044_v17  ;;  %v1410_v32 = vmax.f32 %v1408_v58, 0.0  ;;  %v3614_v58 = vld [vmem:[#allocation7_spill] sm:$0xff] }
 0x33e   : > { %v1411_v56 = vmin.f32 %v1409_v42, 1.0 }
 0x33f   : > { %v1412_v6 = vmin.f32 %v1410_v32, 1.0 }
 0x340   : > { %v1413_v0 = vmul.f32 %v1411_v56, %v1043_v13  ;;  %v3609_v13 = vld [vmem:[#allocation4_spill] sm:$0xff]  ;;  %v3617_v56 = vld [vmem:[#allocation11_spill] sm:$0xff] }
 0x341   : > { %v1414_v47 = vmul.f32 %v1412_v6, %v1044_v17  ;;  %v3612_v17 = vld [vmem:[#allocation3_spill] sm:$0xff] }
 0x344   : > { %v1485_v37 = vpop.f32.mrb[6].mxu0 }
 0x345   : > { %v1487_v55 = vpop.f32.mrb[7].mxu0  ;;  %v1490_v21 = vand.u32 2147483647, %v1485_v37 }
 0x346   : > { %v1491_v28 = vand.u32 2147483647, %v1487_v55 }
 0x347   : > { %v1563_v34 = vpop.f32.mrb[6].mxu1 }
 0x348   : > { %v1568_v1 = vand.u32 2147483647, %v1563_v34  ;;  %v1565_v51 = vpop.f32.mrb[7].mxu1 }
 0x349   : > { %v1569_v16 = vand.u32 2147483647, %v1565_v51 }
 0x34a   : > { %v1570_v11 = vadd.f32 %v1568_v1, %v1490_v21  ;;  %v2256_v1 = vld [vmem:[%s3542_s9 + $0x4] sm:$0xf] }
 0x34b   : > { %v1571_v20 = vadd.f32 %v1569_v16, %v1491_v28 }
 0x34c   : > { %v1731_v52 = vadd.f32 %v1570_v11, %v1134_v48  ;;  %v3610_v11 = vld [vmem:[#allocation2_spill] sm:$0xff] }
 0x34d   : > { %v1732_v43 = vadd.f32 %v1571_v20, %v1135_v44  ;;  %v3611_v44 = vld [vmem:[#allocation5_spill] sm:$0xff] }
 0x34e   : > { %v3329_v45 = vadd.f32 %v1731_v52, %v1320_v18 }
 0x34f   : > { %v3331_v59 = vadd.f32 %v1732_v43, %v1321_v25 }
 0x350   : > { %1735 = vrot.lane.b32.xlu1 %v3329_v45, %s2489_s15 }
 0x351   : > { %1737 = vrot.lane.b32.xlu0 %v3331_v59, %s2489_s15 }
 0x354   : > { %1743 = vrot.lane.b32.xlu1 %v3329_v45, %s2488_s14 }
 0x355   : > { %1745 = vrot.lane.b32.xlu0 %v3331_v59, %s2488_s14 }
 0x356   : > { %v1643_v5 = vpop.f32.mrb[8].mxu0 }
 0x357   : > { %v1645_v63 = vpop.f32.mrb[9].mxu0  ;;  %v1648_v24 = vand.u32 2147483647, %v1643_v5  ;;  %v3616_v5 = vld [vmem:[#allocation9_spill] sm:$0xff] }
 0x358   : > { %1751 = vrot.lane.b32.xlu1 %v3329_v45, %s2490_s19  ;;  %v1649_v41 = vand.u32 2147483647, %v1645_v63 }
 0x359   : > { %v1721_v40 = vpop.f32.mrb[8].mxu1  ;;  %1753 = vrot.lane.b32.xlu0 %v3331_v59, %s2490_s19 }
 0x35a   : > { %v1726_v57 = vand.u32 2147483647, %v1721_v40  ;;  %v1723_v23 = vpop.f32.mrb[9].mxu1 }
 0x35b   : > { %v1727_v7 = vand.u32 2147483647, %v1723_v23  ;;  %v3618_v23 = vld [vmem:[#allocation12_spill] sm:$0xff] }
 0x35c   : > { %v1728_v37 = vadd.f32 %v1726_v57, %v1648_v24  ;;  %1759 = vrot.lane.b32.xlu1 %v3329_v45, %s2491_s20  ;;  %v1767_v57 = vmul.f32 %v3329_v45, %v3617_v56 }
 0x35d   : > { %v1729_v55 = vadd.f32 %v1727_v7, %v1649_v41  ;;  %1761 = vrot.lane.b32.xlu0 %v3331_v59, %s2491_s20  ;;  %v3619_v7 = vld [vmem:[#allocation13_spill] sm:$0xff] }
 0x35e   : > { %v1885_v21 = vadd.f32 %v1728_v37, %v1227_v36  ;;  %v3620_v37 = vld [vmem:[#allocation10_spill] sm:$0xff] }
 0x35f   : > { %v1886_v28 = vadd.f32 %v1729_v55, %v1228_v50  ;;  %v1768_v50 = vmul.f32 %v3331_v59, %v3620_v37 }
 0x360   : > { %v3351_v34 = vadd.f32 %v1885_v21, %v1413_v0  ;;  %1769 = vrot.lane.b32.xlu1 %v3329_v45, %s2492_s21 }
 0x361   : > { %v3355_v35 = vadd.f32 %v1886_v28, %v1414_v47  ;;  %1771 = vrot.lane.b32.xlu0 %v3331_v59, %s2492_s21 }
 0x364   : > { %1777 = vrot.lane.b32.xlu1 %v3329_v45, %s2493_s22 }
 0x365   : > { %1779 = vrot.lane.b32.xlu0 %v3331_v59, %s2493_s22 }
 0x368   : > { %1785 = vrot.lane.b32.xlu1 %v3329_v45, %s3608_s23 }
 0x369   : > { %1787 = vrot.lane.b32.xlu0 %v3331_v59, %s3608_s23 }
 0x36c   : > { %1889 = vrot.lane.b32.xlu1 %v3351_v34, %s2489_s15 }
 0x36d   : > { %1891 = vrot.lane.b32.xlu0 %v3355_v35, %s2489_s15 }
 0x370   : > { %1897 = vrot.lane.b32.xlu1 %v3351_v34, %s2488_s14 }
 0x371   : > { %1899 = vrot.lane.b32.xlu0 %v3355_v35, %s2488_s14  ;;  %s482_s14 = scalar_lea.vmem %s3543_s10, %s2262_s30 }
 0x374   : > { %1905 = vrot.lane.b32.xlu1 %v3351_v34, %s2490_s19 }
 0x375   : > { %1907 = vrot.lane.b32.xlu0 %v3355_v35, %s2490_s19 }
 0x378   : > { %1913 = vrot.lane.b32.xlu1 %v3351_v34, %s2491_s20 }
 0x379   : > { %1915 = vrot.lane.b32.xlu0 %v3355_v35, %s2491_s20 }
 0x37c   : > { %1923 = vrot.lane.b32.xlu1 %v3351_v34, %s2492_s21 }
 0x37d   : > { %1925 = vrot.lane.b32.xlu0 %v3355_v35, %s2492_s21 }
 0x380   : > { %1931 = vrot.lane.b32.xlu1 %v3351_v34, %s2493_s22 }
 0x381   : > { %1933 = vrot.lane.b32.xlu0 %v3355_v35, %s2493_s22 }
 0x384   : > { %1939 = vrot.lane.b32.xlu1 %v3351_v34, %s3608_s23 }
 0x385   : > { %1941 = vrot.lane.b32.xlu0 %v3355_v35, %s3608_s23 }
 0x388   : > { %1793 = vrot.lane.b32.xlu1 %v3329_v45, %s2497_s24 }
 0x389   : > { %1795 = vrot.lane.b32.xlu0 %v3331_v59, %s2497_s24 }
 0x38c   : > { %1947 = vrot.lane.b32.xlu1 %v3351_v34, %s2497_s24 }
 0x38d   : > { %1949 = vrot.lane.b32.xlu0 %v3355_v35, %s2497_s24 }
 0x390   : > { %1804 = vperm.xlu1 %2477, %v1801_v22  }
 0x391   : > { %1959 = vperm.xlu0 %2476, %v2256_v1  }
 0x3c2   : > { %v1736_v51 = vpop.permute.xlu1 %1735 }
 0x3c3   : > { %v1738_v38 = vpop.permute.xlu0 %1737 }
 0x3c4   : > { %v1739_v39 = vsel %vm513_vm1, %v1736_v51, %v1738_v38  ;;  %v1740_v14 = vsel %vm513_vm1, %v1738_v38, %v1736_v51 }
 0x3c5   : > { %v1741_v2 = vmul.f32 %v1740_v14, %v3609_v13  ;;  %v1742_v15 = vmul.f32 %v1739_v39, %v3610_v11 }
 0x3c6   : > { %v1744_v16 = vpop.permute.xlu1 %1743 }
 0x3c7   : > { %v1746_v46 = vpop.permute.xlu0 %1745 }
 0x3c8   : > { %v1747_v48 = vsel %vm530_vm0, %v1744_v16, %v1746_v46  ;;  %v1748_v26 = vsel %vm530_vm0, %v1746_v46, %v1744_v16 }
 0x3c9   : > { %v1749_v8 = vmul.f32 %v1748_v26, %v3611_v44  ;;  %v1750_v19 = vmul.f32 %v1747_v48, %v3612_v17 }
 0x3ca   : > { %v1752_v20 = vpop.permute.xlu1 %1751 }
 0x3cb   : > { %v2428_v53 = vpack.c.bf16 %v1749_v8, %v1741_v2  ;;  %v1754_v18 = vpop.permute.xlu0 %1753  ;;  %v2426_v52 = vpack.c.bf16 %v1750_v19, %v1742_v15 }
 0x3cc   : > { %v1755_v54 = vsel %vm547_vm2, %v1752_v20, %v1754_v18  ;;  %v1756_v25 = vsel %vm547_vm2, %v1754_v18, %v1752_v20 }
 0x3cd   : > { %2427 = vmatprep.subr.bf16.mxu0 %v2426_v52  ;;  %v1757_v49 = vmul.f32 %v1756_v25, %v3613_v31  ;;  %v1758_v30 = vmul.f32 %v1755_v54, %v3614_v58 }
 0x3ce   : > { %2429 = vmatpush1.bf16.msra.mxu0 %v2428_v53  ;;  %v1760_v43 = vpop.permute.xlu1 %1759 }
 0x3cf   : > { %v1762_v12 = vpop.permute.xlu0 %1761 }
 0x3d0   : > { %v1763_v3 = vsel %vm564_vm3, %v1760_v43, %v1762_v12  ;;  %v1764_v27 = vsel %vm564_vm3, %v1762_v12, %v1760_v43 }
 0x3d1   : > { %v1765_v42 = vmul.f32 %v1764_v27, %v3615_v33  ;;  %v1766_v32 = vmul.f32 %v1763_v3, %v3616_v5 }
 0x3d2   : > { %v1770_v63 = vpop.permute.xlu1 %1769 }
 0x3d3   : > { %v2432_v4 = vpack.c.bf16 %v1765_v42, %v1757_v49  ;;  %v1772_v24 = vpop.permute.xlu0 %1771  ;;  %v2430_v29 = vpack.c.bf16 %v1766_v32, %v1758_v30 }
 0x3d4   : > { %v1773_v40 = vsel %vm591_vm4, %v1770_v63, %v1772_v24  ;;  %v1774_v41 = vsel %vm591_vm4, %v1772_v24, %v1770_v63 }
 0x3d5   : > { %v1775_v6 = vmul.f32 %v1773_v40, %v3618_v23  ;;  %v1776_v36 = vmul.f32 %v1774_v41, %v3619_v7  ;;  %2431 = vmatprep.subr.bf16.mxu0 %v2430_v29 }
 0x3d6   : > { %2433 = vmatpush1.bf16.msra.mxu0 %v2432_v4  ;;  %v1778_v55 = vpop.permute.xlu1 %1777 }
 0x3d7   : > { %v2436_v0 = vpack.c.bf16 %v1775_v6, %v1767_v57  ;;  %v1780_v21 = vpop.permute.xlu0 %1779  ;;  %v2434_v47 = vpack.c.bf16 %v1776_v36, %v1768_v50  ;;  %v1921_v50 = vmul.f32 %v3351_v34, %v3617_v56 }
 0x3d8   : > { %v1781_v28 = vsel %vm608_vm5, %v1778_v55, %v1780_v21  ;;  %v1782_v45 = vsel %vm608_vm5, %v1780_v21, %v1778_v55 }
 0x3d9   : > { %2435 = vmatprep.subr.bf16.mxu0 %v2434_v47  ;;  %v1783_v38 = vmul.f32 %v1781_v28, %v2802_v60  ;;  %v1784_v39 = vmul.f32 %v1782_v45, %v2805_v61 }
 0x3da   : > { %v1786_v22 = vpop.permute.xlu1 %1785  ;;  %2437 = vmatpush1.bf16.msra.mxu0 %v2436_v0 }
 0x3db   : > { %v1788_v1 = vpop.permute.xlu0 %1787 }
 0x3dc   : > { %v1789_v51 = vsel %vm625_vm6, %v1786_v22, %v1788_v1  ;;  %v1790_v59 = vsel %vm625_vm6, %v1788_v1, %v1786_v22 }
 0x3dd   : > { %v1791_v14 = vmul.f32 %v1789_v51, %v2809_v62  ;;  %v1792_v16 = vmul.f32 %v1790_v59, %v2812_v9 }
 0x3de   : > { %v1890_v46 = vpop.permute.xlu1 %1889 }
 0x3df   : > { %v2440_v48 = vpack.c.bf16 %v1791_v14, %v1783_v38  ;;  %v1892_v26 = vpop.permute.xlu0 %1891  ;;  %v2438_v2 = vpack.c.bf16 %v1792_v16, %v1784_v39 }
 0x3e0   : > { %v1893_v15 = vsel %vm513_vm1, %v1890_v46, %v1892_v26  ;;  %v1894_v8 = vsel %vm513_vm1, %v1892_v26, %v1890_v46  ;;  %v1730_v46 = vld [vmem:[%s3541_s8] sm:$0xf] }
 0x3e1   : > { %2439 = vmatprep.subr.bf16.mxu0 %v2438_v2  ;;  %v1895_v52 = vmul.f32 %v1894_v8, %v3609_v13  ;;  %v1896_v54 = vmul.f32 %v1893_v15, %v3610_v11 }
 0x3e2   : > { %v1898_v19 = vpop.permute.xlu1 %1897  ;;  %2441 = vmatpush1.bf16.msra.mxu0 %v2440_v48 }
 0x3e3   : > { %v1900_v20 = vpop.permute.xlu0 %1899 }
 0x3e4   : > { %v1901_v53 = vsel %vm530_vm0, %v1898_v19, %v1900_v20  ;;  %v1902_v18 = vsel %vm530_vm0, %v1900_v20, %v1898_v19  ;;  %v2255_v19 = vld [vmem:[%s3541_s8 + $0x4] sm:$0xf] }
 0x3e5   : > { %v1903_v25 = vmul.f32 %v1902_v18, %v3611_v44  ;;  %v1904_v43 = vmul.f32 %v1901_v53, %v3612_v17 }
 0x3e6   : > { %v1906_v12 = vpop.permute.xlu1 %1905 }
 0x3e7   : > { %v2444_v3 = vpack.c.bf16 %v1903_v25, %v1895_v52  ;;  %v1908_v27 = vpop.permute.xlu0 %1907  ;;  %v2442_v49 = vpack.c.bf16 %v1904_v43, %v1896_v54 }
 0x3e8   : > { %v1909_v30 = vsel %vm547_vm2, %v1906_v12, %v1908_v27  ;;  %v1910_v42 = vsel %vm547_vm2, %v1908_v27, %v1906_v12 }
 0x3e9   : > { %2443 = vmatprep.subr.bf16.mxu1 %v2442_v49  ;;  %v1911_v17 = vmul.f32 %v1910_v42, %v3613_v31  ;;  %v1912_v63 = vmul.f32 %v1909_v30, %v3614_v58 }
 0x3ea   : > { %2445 = vmatpush1.bf16.msra.mxu1 %v2444_v3  ;;  %v1914_v32 = vpop.permute.xlu1 %1913 }
 0x3eb   : > { %v1916_v13 = vpop.permute.xlu0 %1915 }
 0x3ec   : > { %v1917_v11 = vsel %vm564_vm3, %v1914_v32, %v1916_v13  ;;  %v1918_v44 = vsel %vm564_vm3, %v1916_v13, %v1914_v32 }
 0x3ed   : > { %v1919_v4 = vmul.f32 %v1918_v44, %v3615_v33  ;;  %v1920_v24 = vmul.f32 %v1917_v11, %v3616_v5  ;;  %v1922_v33 = vmul.f32 %v3355_v35, %v3620_v37 }
 0x3ee   : > { %v1924_v29 = vpop.permute.xlu1 %1923 }
 0x3ef   : > { %v2448_v40 = vpack.c.bf16 %v1919_v4, %v1911_v17  ;;  %v1926_v41 = vpop.permute.xlu0 %1925  ;;  %v2446_v57 = vpack.c.bf16 %v1920_v24, %v1912_v63 }
 0x3f0   : > { %v1927_v6 = vsel %vm591_vm4, %v1924_v29, %v1926_v41  ;;  %v1928_v36 = vsel %vm591_vm4, %v1926_v41, %v1924_v29 }
 0x3f1   : > { %v1929_v31 = vmul.f32 %v1927_v6, %v3618_v23  ;;  %v1930_v58 = vmul.f32 %v1928_v36, %v3619_v7  ;;  %2447 = vmatprep.subr.bf16.mxu1 %v2446_v57 }
 0x3f2   : > { %2449 = vmatpush1.bf16.msra.mxu1 %v2448_v40  ;;  %v1932_v5 = vpop.permute.xlu1 %1931 }
 0x3f3   : > { %v2452_v55 = vpack.c.bf16 %v1929_v31, %v1921_v50  ;;  %v1934_v0 = vpop.permute.xlu0 %1933  ;;  %v2450_v21 = vpack.c.bf16 %v1930_v58, %v1922_v33 }
 0x3f4   : > { %v1935_v47 = vsel %vm608_vm5, %v1932_v5, %v1934_v0  ;;  %v1936_v34 = vsel %vm608_vm5, %v1934_v0, %v1932_v5 }
 0x3f5   : > { %2451 = vmatprep.subr.bf16.mxu1 %v2450_v21  ;;  %v1937_v37 = vmul.f32 %v1935_v47, %v2802_v60  ;;  %v1938_v28 = vmul.f32 %v1936_v34, %v2805_v61  ;;  %v2478_v60 = vld [vmem:[%s3535_s2 + $0x10] ss:$0 sm:$0xff]  ;;  %v2479_v61 = vld [vmem:[%s3535_s2 + $0x18] ss:$0 sm:$0xff] }
 0x3f6   : > { %2453 = vmatpush1.bf16.msra.mxu1 %v2452_v55  ;;  %v1940_v56 = vpop.permute.xlu1 %1939 }
 0x3f7   : > { %v1942_v23 = vpop.permute.xlu0 %1941 }
 0x3f8   : > { %v1943_v7 = vsel %vm625_vm6, %v1940_v56, %v1942_v23  ;;  %v1944_v35 = vsel %vm625_vm6, %v1942_v23, %v1940_v56 }
 0x3f9   : > { %v1945_v45 = vmul.f32 %v1943_v7, %v2809_v62  ;;  %v1946_v22 = vmul.f32 %v1944_v35, %v2812_v9 }
 0x3fa   : > { %v1794_v1 = vpop.permute.xlu1 %1793 }
 0x3fb   : > { %v2456_v51 = vpack.c.bf16 %v1945_v45, %v1937_v37  ;;  %v1796_v59 = vpop.permute.xlu0 %1795  ;;  %v2454_v38 = vpack.c.bf16 %v1946_v22, %v1938_v28 }
 0x3fc   : > { %v1797_v39 = vsel %vm642_vm7, %v1794_v1, %v1796_v59  ;;  %v1798_v14 = vsel %vm642_vm7, %v1796_v59, %v1794_v1 }
 0x3fd   : > { %v1799_v16 = vmul.f32 %v2478_v60, %v1797_v39  ;;  %v1800_v62 = vmul.f32 %v2479_v61, %v1798_v14  ;;  %2455 = vmatprep.subr.bf16.mxu1 %v2454_v38 }
 0x3fe   : > { %2457 = vmatpush1.bf16.msra.mxu1 %v2456_v51  ;;  %v1948_v9 = vpop.permute.xlu1 %1947 }
 0x3ff   : > { %v1950_v48 = vpop.permute.xlu0 %1949  ;;  %1826 = vmatprep.subr.mxu0 %v1800_v62 }
 0x400   : > { %v1951_v26 = vsel %vm642_vm7, %v1948_v9, %v1950_v48  ;;  %v1952_v2 = vsel %vm642_vm7, %v1950_v48, %v1948_v9  ;;  %1827 = vmatpush1.msra.mxu0 %v1799_v16 }
 0x401   : > { %v1953_v15 = vmul.f32 %v2478_v60, %v1951_v26  ;;  %v1954_v8 = vmul.f32 %v2479_v61, %v1952_v2  ;;  %2254 = vmatmul.mubr.msk.f32.vlgmr.msra.gmra.mrb[10].mxu0 %vm661_vm8, %v1730_v46 }
 0x403   : > { %1981 = vmatprep.subr.mxu1 %v1954_v8 }
 0x404   : > { %1982 = vmatpush1.msra.mxu1 %v1953_v15 }
 0x405   : > { %2257 = vmatmul.mubr.msk.f32.vlgmr.msra.gmra.mrb[10].mxu1 %vm661_vm8, %v2255_v19 }
 0x40f   : > { %v1805_v20 = vpop.permute.xlu1 %1804 }
 0x410   : > { %v1960_v25 = vpop.permute.xlu0 %1959 }
 0x4d4   : > { %v1876_v53 = vpop.f32.mrb[10].mxu0 }
 0x4d5   : > { %v1877_v18 = vadd.f32 %v1876_v53, %v1805_v20  ;;  %v1878_v52 = vpop.f32.mrb[11].mxu0 }
 0x4d6   : > { %v1879_v10 = vadd.f32 %v1878_v52, %v1805_v20 }
 0x4d7   : > { %v1881_v54 = vmax.f32 %v1877_v18, 0.0 }
 0x4d8   : > { %v1882_v43 = vmax.f32 %v1879_v10, 0.0  ;;  %v2031_v12 = vpop.f32.mrb[10].mxu1 }
 0x4d9   : > { %v2032_v3 = vadd.f32 %v2031_v12, %v1960_v25  ;;  %v2033_v27 = vpop.f32.mrb[11].mxu1 }
 0x4da   : > { %v2040_v49 = vcombine.low %v1881_v54, %v1882_v43  ;;  %v2034_v30 = vadd.f32 %v2033_v27, %v1960_v25 }
 0x4db   : > { %v2036_v42 = vmax.f32 %v2032_v3, 0.0 }
 0x4dc   : > { %2042 = vst [vmem:[%s482_s14] sm:$0xff] %v2040_v49  ;;  %v2037_v32 = vmax.f32 %v2034_v30, 0.0 }
 0x4de   : > { %v2045_v13 = vcombine.low %v2036_v42, %v2037_v32 }
 0x4e0   : > { %2047 = vst [vmem:[%s487_s26] sm:$0xff] %v2045_v13 }
 0x4e1 PF: > { %s24_s25 = sadd.s32 1, %s2486_s25  }
 0x4e2   : > { %p21_p4 = scmp.ge.s32.totalorder %s24_s25, 4  }
 0x4e4   :  { %23 = sbr.rel (!%p21_p4) target bundleno = 1 (0x1), region = 142 }

</bundles_post_ra>
